<compile_context>
chip_gen: v6e
topology: v6e:2x2x1
jax: 0.10.0
libtpu: 0.0.40
codegen_flags: <defaults>
</compile_context>

<pallas_src>
import functools

import jax
import jax.numpy as jnp
from jax.experimental import pallas as pl
from jax.experimental.pallas import tpu as pltpu


# ---------------- helpers ----------------

def _round_up(x, m):
    return ((x + m - 1) // m) * m


def _pad2(a, rows, cols, dtype=None):
    """Zero-pad a 2-D array to (rows, cols), optionally casting dtype."""
    dtype = a.dtype if dtype is None else dtype
    out = jnp.zeros((rows, cols), dtype)
    return out.at[: a.shape[0], : a.shape[1]].set(a.astype(dtype))


# ---------------- fused Pallas kernel ----------------

def _fused_gnn_kernel(x_ref, adj_ref, pool_ref,
                      emb_w_ref, emb_b_ref,
                      conv_w_ref, conv_b_ref,          # stacked [L,Hp,Hp] bf16 / [L,1,Hp] f32
                      lin1_w_ref, lin1_b_ref,
                      lin2_w_ref, lin2_b_ref,
                      o_ref,
                      h_ref, hw_ref,                    # VMEM scratch, persist across grid
                      *, tile_m, use_residual):
    f32 = jnp.float32
    bf16 = jnp.bfloat16
    l = pl.program_id(0)          # layer index            (arbitrary / sequential)
    r = pl.program_id(1)          # adjacency row tile     (arbitrary / sequential)
    last_l = pl.num_programs(0) - 1
    last_r = pl.num_programs(1) - 1

    # ---- once per forward: node embedding, full h kept resident in VMEM ----
    @pl.when(jnp.logical_and(l == 0, r == 0))
    def _():
        h_ref[...] = (
            jnp.dot(x_ref[...], emb_w_ref[...], preferred_element_type=f32)
            + emb_b_ref[...])

    # ---- once per layer: hw = (h @ W_l), downcast to bf16 as MXU operand ----
    @pl.when(r == 0)
    def _():
        hw_ref[...] = jnp.dot(
            h_ref[...].astype(bf16), conv_w_ref[0],
            preferred_element_type=f32).astype(bf16)

    # ---- every step: aggregate one streamed Â row block (bf16 MXU, f32 acc) ----
    row0 = pl.multiple_of(r * tile_m, tile_m)
    agg = (jnp.dot(adj_ref[...], hw_ref[...], preferred_element_type=f32)
           + conv_b_ref[0])                              # BN folded into W/b already
    act = jnp.maximum(agg, 0.0)                          # ReLU, f32 epilogue
    h_blk = h_ref[pl.ds(row0, tile_m), :]                # pre-layer activations (identity)
    h_ref[pl.ds(row0, tile_m), :] = (act + h_blk) if use_residual else act
    # In-place update of h is safe: hw for this layer was materialized at r == 0 and the
    # residual only reads this row block before overwriting it.

    # ---- final step: global mean pool (matmul) + 2-layer MLP head ----
    @pl.when(jnp.logical_and(l == last_l, r == last_r))
    def _():
        pooled = jnp.dot(pool_ref[...], h_ref[...].astype(bf16),
                         preferred_element_type=f32)
        z = jnp.maximum(
            jnp.dot(pooled, lin1_w_ref[...], preferred_element_type=f32)
            + lin1_b_ref[...], 0.0)
        o_ref[...] = (jnp.dot(z, lin2_w_ref[...], preferred_element_type=f32)
                      + lin2_b_ref[...])


# ---------------- parameter prep (BN fold + padding + stacking + bf16 cast) ----------------

def prepare_inference_params(params, eps=1e-5):
    """Fold BatchNorm into the GCN conv weights, pad the hidden dim to 128 lanes (only),
    keep contraction-only dims unpadded (mult. of 8), stack per-layer weights, and cast
    the big matmul operands to bf16."""
    F, H = params["emb_w"].shape
    H2 = params["lin1_w"].shape[1]
    Fp = _round_up(F, 8)       # contraction-only dim (not padded to 128)
    Hp = _round_up(H, 128)     # hidden channels live on the 128-lane axis
    H2p = _round_up(H2, 8)     # contraction-only dim of lin2
    Op = 128                   # lane-dense output width for the head store

    conv_ws, conv_bs = [], []
    for layer in params["layers"]:
        scale = layer["bn_gamma"] * jax.lax.rsqrt(layer["bn_rvar"] + eps)     # [1, H]
        w_fold = layer["conv_w"] * scale                                      # [H, H]
        b_fold = (layer["conv_b"] - layer["bn_rmean"]) * scale + layer["bn_beta"]
        conv_ws.append(_pad2(w_fold, Hp, Hp, jnp.bfloat16))
        conv_bs.append(_pad2(b_fold, 1, Hp, jnp.float32))

    return {
        "emb_w": _pad2(params["emb_w"], Fp, Hp, jnp.bfloat16),
        "emb_b": _pad2(params["emb_b"], 1, Hp, jnp.float32),
        "conv_w": jnp.stack(conv_ws),                      # [L, Hp, Hp] bf16
        "conv_b": jnp.stack(conv_bs),                      # [L, 1, Hp]  f32
        "lin1_w": _pad2(params["lin1_w"], Hp, H2p, jnp.float32),
        "lin1_b": _pad2(params["lin1_b"], 1, H2p, jnp.float32),
        "lin2_w": _pad2(params["lin2_w"], H2p, Op, jnp.float32),
        "lin2_b": _pad2(params["lin2_b"], 1, Op, jnp.float32),
    }


# ---------------- forward (single pallas_call, grid = (layers, Â row tiles)) ----------------

def molecular_gnn_forward(fused, x, adj_p, pool_p, *, num_graphs, use_residual,
                          tile_m=256):
    Np = adj_p.shape[0]
    Gp = pool_p.shape[0]
    Fp = fused["emb_w"].shape[0]
    Hp = fused["emb_w"].shape[1]
    H2p = fused["lin1_w"].shape[1]
    Op = fused["lin2_w"].shape[1]
    L = fused["conv_w"].shape[0]
    assert Np % 128 == 0 and Gp % 8 == 0

    # Row-tile of Â per grid step (review: >=256 ideal on v6e/v7x, 128 fine on v5e).
    tile_m = min(tile_m, Np)
    tile_m = max(128, (tile_m // 128) * 128)
    while Np % tile_m:
        tile_m -= 128
    R = Np // tile_m

    # bf16 MXU operands (f32 accumulation happens inside the kernel). Zero-padded Â / pool
    # columns for padded nodes stay exactly 0 in bf16, so padded rows never leak into outputs.
    x_p = _pad2(x, Np, Fp, jnp.bfloat16)
    adj_bf = adj_p.astype(jnp.bfloat16)
    pool_bf = pool_p.astype(jnp.bfloat16)

    # VMEM limit sized from the real footprint (resident operands + double-buffered streams),
    # instead of a blanket constant; clamp to a range valid on v5e/v6e/v7x.
    bfb, f4 = 2, 4
    resident = (Np * Fp * bfb + Gp * Np * bfb                 # x, pool
                + Fp * Hp * bfb + Hp * f4                     # emb_w, emb_b
                + Hp * H2p * f4 + H2p * f4                    # lin1
                + H2p * Op * f4 + Op * f4                     # lin2
                + Gp * Op * f4                                # output block
                + Np * Hp * f4 + Np * Hp * bfb)               # h, hw scratch
    streamed = 2 * (tile_m * Np * bfb + Hp * Hp * bfb + Hp * f4)   # adj / conv_w / conv_b bufs
    vmem_limit = int(min(max(2 * (resident + streamed), 32 * 1024 * 1024),
                         100 * 1024 * 1024))

    flops = (2 * Np * Fp * Hp
             + L * (2 * Np * Hp * Hp + 2 * Np * Np * Hp)
             + 2 * Gp * Np * Hp + 2 * Gp * Hp * H2p + 2 * Gp * H2p * Op)
    bytes_accessed = (L * Np * Np * bfb                        # Â re-streamed per layer
                      + Np * Fp * bfb + Gp * Np * bfb
                      + L * (Hp * Hp * bfb + Hp * f4)
                      + Fp * Hp * bfb + Hp * f4
                      + Hp * H2p * f4 + H2p * Op * f4 + Gp * Op * f4)
    cost = pl.CostEstimate(flops=int(flops), transcendentals=0,
                           bytes_accessed=int(bytes_accessed))

    kernel = functools.partial(_fused_gnn_kernel, tile_m=tile_m,
                               use_residual=use_residual)

    grid_spec = pltpu.PrefetchScalarGridSpec(
        num_scalar_prefetch=0,
        grid=(L, R),
        in_specs=[
            pl.BlockSpec((Np, Fp), lambda l, r: (0, 0)),        # x (resident)
            pl.BlockSpec((tile_m, Np), lambda l, r: (r, 0)),    # Â row stream (dbl-buffered)
            pl.BlockSpec((Gp, Np), lambda l, r: (0, 0)),        # pool matrix (resident)
            pl.BlockSpec((Fp, Hp), lambda l, r: (0, 0)),        # emb_w
            pl.BlockSpec((1, Hp), lambda l, r: (0, 0)),         # emb_b
            pl.BlockSpec((1, Hp, Hp), lambda l, r: (l, 0, 0)),  # conv_w[l]
            pl.BlockSpec((1, 1, Hp), lambda l, r: (l, 0, 0)),   # conv_b[l]
            pl.BlockSpec((Hp, H2p), lambda l, r: (0, 0)),       # lin1_w
            pl.BlockSpec((1, H2p), lambda l, r: (0, 0)),        # lin1_b
            pl.BlockSpec((H2p, Op), lambda l, r: (0, 0)),       # lin2_w
            pl.BlockSpec((1, Op), lambda l, r: (0, 0)),         # lin2_b
        ],
        out_specs=pl.BlockSpec((Gp, Op), lambda l, r: (0, 0)),  # written on final step only
        scratch_shapes=[
            pltpu.VMEM((Np, Hp), jnp.float32),    # h  (layer activations, f32, resident)
            pltpu.VMEM((Np, Hp), jnp.bfloat16),   # hw = h @ W_l  (bf16 MXU operand)
        ],
    )

    out_p = pl.pallas_call(
        kernel,
        grid_spec=grid_spec,
        out_shape=jax.ShapeDtypeStruct((Gp, Op), jnp.float32),
        compiler_params=pltpu.CompilerParams(
            # Layer axis and row-tile axis both carry the h/hw scratch dependency.
            dimension_semantics=("arbitrary", "arbitrary"),
            vmem_limit_bytes=vmem_limit),
        cost_estimate=cost,
    )(x_p, adj_bf, pool_bf,
      fused["emb_w"], fused["emb_b"],
      fused["conv_w"], fused["conv_b"],
      fused["lin1_w"], fused["lin1_b"],
      fused["lin2_w"], fused["lin2_b"])

    return out_p[:num_graphs, :1]


# ---------------- graph preprocessing (glue, built directly at padded size) ----------------

def gcn_norm_adj(edge_index, num_nodes, padded_nodes):
    """Dense padded Â = D^-1/2 (A + I) D^-1/2; padded rows/cols stay exactly zero."""
    # TODO(synk): assumes edge_index has no duplicate edges / pre-existing self-loops
    # (PyG's gcn_norm uses add_remaining_self_loops, which deduplicates).
    src, dst = edge_index
    adj = jnp.zeros((padded_nodes, padded_nodes), jnp.float32)
    adj = adj.at[dst, src].add(1.0)
    ids = jnp.arange(num_nodes)
    adj = adj.at[ids, ids].add(1.0)          # self-loops only on real nodes
    deg = adj.sum(axis=1)
    dinv = jnp.where(deg > 0.0, jax.lax.rsqrt(jnp.maximum(deg, 1e-12)), 0.0)
    return adj * dinv[:, None] * dinv[None, :]


def mean_pool_matrix(batch, num_graphs, padded_graphs, padded_nodes):
    """P[g, n] = 1/count_g if batch[n] == g else 0, built directly at padded size."""
    n = batch.shape[0]
    batch_p = jnp.full((padded_nodes,), -1, jnp.int32).at[:n].set(batch)
    onehot = (batch_p[None, :] == jnp.arange(padded_graphs)[:, None]).astype(jnp.float32)
    counts = jnp.maximum(onehot.sum(axis=1, keepdims=True), 1.0)
    return onehot / counts


# ---------------- references ----------------

def reference_forward(params, x, adj_norm, pool_mat, *, use_residual, eps=1e-5):
    """Pure-f32 PyTorch-semantics reference (explicit BatchNorm, unpadded)."""
    h = x @ params["emb_w"] + params["emb_b"]
    for layer in params["layers"]:
        identity = h
        h = adj_norm @ (h @ layer["conv_w"]) + layer["conv_b"]
        h = ((h - layer["bn_rmean"]) * jax.lax.rsqrt(layer["bn_rvar"] + eps)
             * layer["bn_gamma"] + layer["bn_beta"])
        h = jnp.maximum(h, 0.0)
        if use_residual:
            h = h + identity
    pooled = pool_mat @ h
    z = jnp.maximum(pooled @ params["lin1_w"] + params["lin1_b"], 0.0)
    return z @ params["lin2_w"] + params["lin2_b"]


def reference_forward_fused(fused, x_p, adj_bf, pool_bf, *, use_residual):
    """Mirrors the kernel's exact cast points (bf16 operands, f32 accumulation)."""
    f32, bf16 = jnp.float32, jnp.bfloat16
    h = jnp.dot(x_p, fused["emb_w"], preferred_element_type=f32) + fused["emb_b"]
    for l in range(fused["conv_w"].shape[0]):
        hw = jnp.dot(h.astype(bf16), fused["conv_w"][l],
                     preferred_element_type=f32).astype(bf16)
        agg = jnp.dot(adj_bf, hw, preferred_element_type=f32) + fused["conv_b"][l]
        act = jnp.maximum(agg, 0.0)
        h = (act + h) if use_residual else act
    pooled = jnp.dot(pool_bf, h.astype(bf16), preferred_element_type=f32)
    z = jnp.maximum(jnp.dot(pooled, fused["lin1_w"]) + fused["lin1_b"], 0.0)
    return jnp.dot(z, fused["lin2_w"]) + fused["lin2_b"]


# ---------------- parameter init ----------------

def init_params(key, num_features, hidden, num_layers):
    keys = jax.random.split(key, 4 + 2 * num_layers)

    def dense(k, fan_in, fan_out):
        scale = 1.0 / jnp.sqrt(jnp.float32(fan_in))
        return jax.random.uniform(k, (fan_in, fan_out), jnp.float32, -scale, scale)

    params = {
        "emb_w": dense(keys[0], num_features, hidden),
        "emb_b": jnp.zeros((1, hidden), jnp.float32),
        "lin1_w": dense(keys[1], hidden, hidden // 2),
        "lin1_b": jnp.zeros((1, hidden // 2), jnp.float32),
        "lin2_w": dense(keys[2], hidden // 2, 1),
        "lin2_b": jnp.zeros((1, 1), jnp.float32),
        "layers": [],
    }
    for i in range(num_layers):
        params["layers"].append({
            "conv_w": dense(keys[4 + 2 * i], hidden, hidden),
            "conv_b": jnp.zeros((1, hidden), jnp.float32),
            "bn_gamma": jnp.ones((1, hidden), jnp.float32),
            "bn_beta": jnp.zeros((1, hidden), jnp.float32),
            "bn_rmean": jnp.zeros((1, hidden), jnp.float32),
            "bn_rvar": jnp.ones((1, hidden), jnp.float32),
        })
    return params


# ---------------- main ----------------

if __name__ == "__main__":
    # Synthetic "ModelConfig"
    NUM_FEATURES = 16
    HIDDEN = 32
    NUM_LAYERS = 3
    USE_RESIDUAL = True
    # TODO(synk): training-mode dropout / BatchNorm statistics and the GAT / GraphConv
    # conv_type variants are not modeled (this forward corresponds to GCN + model.eval()).

    # Synthetic batched graph: 12 graphs x 16 nodes = 192 nodes -> Np = 256 (2 row tiles
    # of 128, so the streamed-Â / multi-step grid path is exercised), ring edges per graph.
    NUM_GRAPHS = 12
    NODES_PER_GRAPH = 16
    N = NUM_GRAPHS * NODES_PER_GRAPH

    key = jax.random.PRNGKey(0)
    k_x, k_p = jax.random.split(key)
    x = jax.random.normal(k_x, (N, NUM_FEATURES), jnp.float32)

    # batch assignment and ring edge_index (symmetric)
    batch = jnp.repeat(jnp.arange(NUM_GRAPHS, dtype=jnp.int32), NODES_PER_GRAPH)
    node_ids = jnp.arange(N, dtype=jnp.int32)
    within = node_ids % NODES_PER_GRAPH
    base = node_ids - within
    nxt = base + (within + 1) % NODES_PER_GRAPH
    src = jnp.concatenate([node_ids, nxt])
    dst = jnp.concatenate([nxt, node_ids])
    edge_index = jnp.stack([src, dst])

    Np = _round_up(N, 128)
    Gp = _round_up(NUM_GRAPHS, 8)
    adj_p = gcn_norm_adj(edge_index, N, Np)                     # (Np, Np) f32, pads zero
    pool_p = mean_pool_matrix(batch, NUM_GRAPHS, Gp, Np)        # (Gp, Np) f32

    params = init_params(k_p, NUM_FEATURES, HIDDEN, NUM_LAYERS)
    fused_params = prepare_inference_params(params)

    fwd = jax.jit(functools.partial(
        molecular_gnn_forward, num_graphs=NUM_GRAPHS,
        use_residual=USE_RESIDUAL, tile_m=128))
    out = fwd(fused_params, x, adj_p, pool_p)
    out = jax.block_until_ready(out)
    assert out.shape == (NUM_GRAPHS, 1), out.shape

    # 1) Cast-matched reference (same bf16 operand boundaries): catches kernel logic bugs.
    Fp = fused_params["emb_w"].shape[0]
    x_p = _pad2(x, Np, Fp, jnp.bfloat16)
    ref_fused = reference_forward_fused(
        fused_params, x_p, adj_p.astype(jnp.bfloat16), pool_p.astype(jnp.bfloat16),
        use_residual=USE_RESIDUAL)[:NUM_GRAPHS, :1]
    assert jnp.allclose(out, ref_fused, atol=5e-3, rtol=5e-3), \
        "Pallas kernel mismatch vs cast-matched reference"

    # 2) Full-f32 PyTorch-semantics reference (loose tolerance for bf16 MXU operands).
    ref = reference_forward(params, x, adj_p[:N, :N], pool_p[:NUM_GRAPHS, :N],
                            use_residual=USE_RESIDUAL)
    assert jnp.allclose(out, ref, atol=1e-1, rtol=5e-2), \
        "Pallas kernel mismatch vs f32 reference"

    print("KERNEL_OK")
</pallas_src>

<mosaic_0001>
module attributes {stable_mosaic.version = 11 : i64} {
  func.func @_fused_gnn_kernel(%arg0: i32, %arg1: i32, %arg2: memref<256x16xbf16, #tpu.memory_space<vmem>>, %arg3: memref<128x256xbf16, #tpu.memory_space<vmem>>, %arg4: memref<16x256xbf16, #tpu.memory_space<vmem>>, %arg5: memref<16x128xbf16, #tpu.memory_space<vmem>>, %arg6: memref<1x128xf32, #tpu.memory_space<vmem>>, %arg7: memref<1x128x128xbf16, #tpu.memory_space<vmem>>, %arg8: memref<1x1x128xf32, #tpu.memory_space<vmem>>, %arg9: memref<128x16xf32, #tpu.memory_space<vmem>>, %arg10: memref<1x16xf32, #tpu.memory_space<vmem>>, %arg11: memref<16x128xf32, #tpu.memory_space<vmem>>, %arg12: memref<1x128xf32, #tpu.memory_space<vmem>>, %arg13: memref<16x128xf32, #tpu.memory_space<vmem>>, %arg14: memref<256x128xf32, #tpu.memory_space<vmem>>, %arg15: memref<256x128xbf16, #tpu.memory_space<vmem>>) attributes {dimension_semantics = [#tpu.dimension_semantics<arbitrary>, #tpu.dimension_semantics<arbitrary>], iteration_bounds = array<i64: 3, 2>, scalar_prefetch = 0 : i64, scratch_operands = 2 : i64, tpu.core_type = #tpu.core_type<tc>, window_params = [{pipeline_mode = #tpu.pipeline_mode<synchronous>, transform_indices = @transform_0, window_bounds = array<i64: 256, 16>}, {transform_indices = @transform_1, window_bounds = array<i64: 128, 256>}, {pipeline_mode = #tpu.pipeline_mode<synchronous>, transform_indices = @transform_2, window_bounds = array<i64: 16, 256>}, {pipeline_mode = #tpu.pipeline_mode<synchronous>, transform_indices = @transform_3, window_bounds = array<i64: 16, 128>}, {pipeline_mode = #tpu.pipeline_mode<synchronous>, transform_indices = @transform_4, window_bounds = array<i64: 1, 128>}, {transform_indices = @transform_5, window_bounds = array<i64: 1, 128, 128>}, {transform_indices = @transform_6, window_bounds = array<i64: 1, 1, 128>}, {pipeline_mode = #tpu.pipeline_mode<synchronous>, transform_indices = @transform_7, window_bounds = array<i64: 128, 16>}, {pipeline_mode = #tpu.pipeline_mode<synchronous>, transform_indices = @transform_8, window_bounds = array<i64: 1, 16>}, {pipeline_mode = #tpu.pipeline_mode<synchronous>, transform_indices = @transform_9, window_bounds = array<i64: 16, 128>}, {pipeline_mode = #tpu.pipeline_mode<synchronous>, transform_indices = @transform_10, window_bounds = array<i64: 1, 128>}, {pipeline_mode = #tpu.pipeline_mode<synchronous>, transform_indices = @transform_11, window_bounds = array<i64: 16, 128>}]} {
    %c0_i32 = arith.constant 0 : i32
    %0 = arith.cmpi eq, %arg0, %c0_i32 : i32
    %c0_i32_0 = arith.constant 0 : i32
    %1 = arith.cmpi eq, %arg1, %c0_i32_0 : i32
    %2 = arith.andi %0, %1 : i1
    %3 = arith.extui %2 : i1 to i32
    %c0_i32_1 = arith.constant 0 : i32
    %4 = arith.cmpi ne, %3, %c0_i32_1 : i32
    scf.if %4 {
      %c0_14 = arith.constant 0 : index
      %c0_15 = arith.constant 0 : index
      %29 = vector.load %arg2[%c0_14, %c0_15] : memref<256x16xbf16, #tpu.memory_space<vmem>>, vector<256x16xbf16>
      %c0_16 = arith.constant 0 : index
      %c0_17 = arith.constant 0 : index
      %30 = vector.load %arg5[%c0_16, %c0_17] : memref<16x128xbf16, #tpu.memory_space<vmem>>, vector<16x128xbf16>
      %cst_18 = arith.constant dense<0.000000e+00> : vector<256x128xf32>
      %31 = tpu.matmul %29, %30, %cst_18 {dimension_numbers = #tpu.dot_dimension_numbers<[1], [0], [0], [1], [0, 0, 1, 1], [], []>} : vector<256x16xbf16>, vector<16x128xbf16>, vector<256x128xf32> -> vector<256x128xf32>
      %c0_19 = arith.constant 0 : index
      %c0_20 = arith.constant 0 : index
      %32 = vector.load %arg6[%c0_19, %c0_20] : memref<1x128xf32, #tpu.memory_space<vmem>>, vector<1x128xf32>
      %33 = vector.broadcast %32 : vector<1x128xf32> to vector<256x128xf32>
      %34 = arith.addf %31, %33 : vector<256x128xf32>
      %c0_21 = arith.constant 0 : index
      %c0_22 = arith.constant 0 : index
      %35 = vector.load %arg14[%c0_21, %c0_22] : memref<256x128xf32, #tpu.memory_space<vmem>>, vector<256x128xf32>
      tpu.vector_store %arg14[%c0_21, %c0_22], %34 {strides = array<i32>} : memref<256x128xf32, #tpu.memory_space<vmem>>, vector<256x128xf32>,
    } else {
    }
    %c0_i32_2 = arith.constant 0 : i32
    %5 = arith.cmpi eq, %arg1, %c0_i32_2 : i32
    %6 = arith.extui %5 : i1 to i32
    %c0_i32_3 = arith.constant 0 : i32
    %7 = arith.cmpi ne, %6, %c0_i32_3 : i32
    scf.if %7 {
      %c0_14 = arith.constant 0 : index
      %c0_15 = arith.constant 0 : index
      %29 = vector.load %arg14[%c0_14, %c0_15] : memref<256x128xf32, #tpu.memory_space<vmem>>, vector<256x128xf32>
      %30 = arith.truncf %29 : vector<256x128xf32> to vector<256x128xbf16>
      %c0_16 = arith.constant 0 : index
      %c0_17 = arith.constant 0 : index
      %c0_18 = arith.constant 0 : index
      %31 = vector.load %arg7[%c0_16, %c0_17, %c0_18] : memref<1x128x128xbf16, #tpu.memory_space<vmem>>, vector<1x128x128xbf16>
      %32 = vector.shape_cast %31 : vector<1x128x128xbf16> to vector<128x128xbf16>
      %cst_19 = arith.constant dense<0.000000e+00> : vector<256x128xf32>
      %33 = tpu.matmul %30, %32, %cst_19 {dimension_numbers = #tpu.dot_dimension_numbers<[1], [0], [0], [1], [0, 0, 1, 1], [], []>} : vector<256x128xbf16>, vector<128x128xbf16>, vector<256x128xf32> -> vector<256x128xf32>
      %34 = arith.truncf %33 : vector<256x128xf32> to vector<256x128xbf16>
      %c0_20 = arith.constant 0 : index
      %c0_21 = arith.constant 0 : index
      %35 = vector.load %arg15[%c0_20, %c0_21] : memref<256x128xbf16, #tpu.memory_space<vmem>>, vector<256x128xbf16>
      tpu.vector_store %arg15[%c0_20, %c0_21], %34 {strides = array<i32>} : memref<256x128xbf16, #tpu.memory_space<vmem>>, vector<256x128xbf16>,
    } else {
    }
    %c128_i32 = arith.constant 128 : i32
    %8 = arith.muli %arg1, %c128_i32 : i32
    %9 = tpu.assume_multiple %8, 128 : i32
    %c0 = arith.constant 0 : index
    %c0_4 = arith.constant 0 : index
    %10 = vector.load %arg3[%c0, %c0_4] : memref<128x256xbf16, #tpu.memory_space<vmem>>, vector<128x256xbf16>
    %c0_5 = arith.constant 0 : index
    %c0_6 = arith.constant 0 : index
    %11 = vector.load %arg15[%c0_5, %c0_6] : memref<256x128xbf16, #tpu.memory_space<vmem>>, vector<256x128xbf16>
    %cst = arith.constant dense<0.000000e+00> : vector<128x128xf32>
    %12 = tpu.matmul %10, %11, %cst {dimension_numbers = #tpu.dot_dimension_numbers<[1], [0], [0], [1], [0, 0, 1, 1], [], []>} : vector<128x256xbf16>, vector<256x128xbf16>, vector<128x128xf32> -> vector<128x128xf32>
    %c0_7 = arith.constant 0 : index
    %c0_8 = arith.constant 0 : index
    %c0_9 = arith.constant 0 : index
    %13 = vector.load %arg8[%c0_7, %c0_8, %c0_9] : memref<1x1x128xf32, #tpu.memory_space<vmem>>, vector<1x1x128xf32>
    %14 = vector.shape_cast %13 : vector<1x1x128xf32> to vector<1x128xf32>
    %15 = vector.broadcast %14 : vector<1x128xf32> to vector<128x128xf32>
    %16 = arith.addf %12, %15 : vector<128x128xf32>
    %cst_10 = arith.constant 0.000000e+00 : f32
    %17 = vector.broadcast %cst_10 : f32 to vector<128x128xf32>
    %18 = arith.maximumf %16, %17 : vector<128x128xf32>
    %19 = arith.index_cast %9 : i32 to index
    %c0_11 = arith.constant 0 : index
    %20 = vector.load %arg14[%19, %c0_11] : memref<256x128xf32, #tpu.memory_space<vmem>>, vector<128x128xf32>
    %21 = arith.addf %18, %20 : vector<128x128xf32>
    %22 = arith.index_cast %9 : i32 to index
    %c0_12 = arith.constant 0 : index
    %23 = vector.load %arg14[%22, %c0_12] : memref<256x128xf32, #tpu.memory_space<vmem>>, vector<128x128xf32>
    tpu.vector_store %arg14[%22, %c0_12], %21 {strides = array<i32>} : memref<256x128xf32, #tpu.memory_space<vmem>>, vector<128x128xf32>,
    %c2_i32 = arith.constant 2 : i32
    %24 = arith.cmpi eq, %arg0, %c2_i32 : i32
    %c1_i32 = arith.constant 1 : i32
    %25 = arith.cmpi eq, %arg1, %c1_i32 : i32
    %26 = arith.andi %24, %25 : i1
    %27 = arith.extui %26 : i1 to i32
    %c0_i32_13 = arith.constant 0 : i32
    %28 = arith.cmpi ne, %27, %c0_i32_13 : i32
    scf.if %28 {
      %c0_14 = arith.constant 0 : index
      %c0_15 = arith.constant 0 : index
      %29 = vector.load %arg4[%c0_14, %c0_15] : memref<16x256xbf16, #tpu.memory_space<vmem>>, vector<16x256xbf16>
      %c0_16 = arith.constant 0 : index
      %c0_17 = arith.constant 0 : index
      %30 = vector.load %arg14[%c0_16, %c0_17] : memref<256x128xf32, #tpu.memory_space<vmem>>, vector<256x128xf32>
      %31 = arith.truncf %30 : vector<256x128xf32> to vector<256x128xbf16>
      %cst_18 = arith.constant dense<0.000000e+00> : vector<16x128xf32>
      %32 = tpu.matmul %29, %31, %cst_18 {dimension_numbers = #tpu.dot_dimension_numbers<[1], [0], [0], [1], [0, 0, 1, 1], [], []>} : vector<16x256xbf16>, vector<256x128xbf16>, vector<16x128xf32> -> vector<16x128xf32>
      %c0_19 = arith.constant 0 : index
      %c0_20 = arith.constant 0 : index
      %33 = vector.load %arg9[%c0_19, %c0_20] : memref<128x16xf32, #tpu.memory_space<vmem>>, vector<128x16xf32>
      %cst_21 = arith.constant dense<0.000000e+00> : vector<16x16xf32>
      %34 = tpu.matmul %32, %33, %cst_21 {dimension_numbers = #tpu.dot_dimension_numbers<[1], [0], [0], [1], [0, 0, 1, 1], [], []>} : vector<16x128xf32>, vector<128x16xf32>, vector<16x16xf32> -> vector<16x16xf32>
      %c0_22 = arith.constant 0 : index
      %c0_23 = arith.constant 0 : index
      %35 = vector.load %arg10[%c0_22, %c0_23] : memref<1x16xf32, #tpu.memory_space<vmem>>, vector<1x16xf32>
      %36 = vector.broadcast %35 : vector<1x16xf32> to vector<16x16xf32>
      %37 = arith.addf %34, %36 : vector<16x16xf32>
      %cst_24 = arith.constant 0.000000e+00 : f32
      %38 = vector.broadcast %cst_24 : f32 to vector<16x16xf32>
      %39 = arith.maximumf %37, %38 : vector<16x16xf32>
      %c0_25 = arith.constant 0 : index
      %c0_26 = arith.constant 0 : index
      %40 = vector.load %arg11[%c0_25, %c0_26] : memref<16x128xf32, #tpu.memory_space<vmem>>, vector<16x128xf32>
      %cst_27 = arith.constant dense<0.000000e+00> : vector<16x128xf32>
      %41 = tpu.matmul %39, %40, %cst_27 {dimension_numbers = #tpu.dot_dimension_numbers<[1], [0], [0], [1], [0, 0, 1, 1], [], []>} : vector<16x16xf32>, vector<16x128xf32>, vector<16x128xf32> -> vector<16x128xf32>
      %c0_28 = arith.constant 0 : index
      %c0_29 = arith.constant 0 : index
      %42 = vector.load %arg12[%c0_28, %c0_29] : memref<1x128xf32, #tpu.memory_space<vmem>>, vector<1x128xf32>
      %43 = vector.broadcast %42 : vector<1x128xf32> to vector<16x128xf32>
      %44 = arith.addf %41, %43 : vector<16x128xf32>
      %c0_30 = arith.constant 0 : index
      %c0_31 = arith.constant 0 : index
      %45 = vector.load %arg13[%c0_30, %c0_31] : memref<16x128xf32, #tpu.memory_space<vmem>>, vector<16x128xf32>
      tpu.vector_store %arg13[%c0_30, %c0_31], %44 {strides = array<i32>} : memref<16x128xf32, #tpu.memory_space<vmem>>, vector<16x128xf32>,
    } else {
    }
    return
  }
  func.func @transform_0(%arg0: i32, %arg1: i32) -> (i32, i32) {
    %c0_i32 = arith.constant 0 : i32
    %c0_i32_0 = arith.constant 0 : i32
    %c0_i32_1 = arith.constant 0 : i32
    return %c0_i32, %c0_i32_0 : i32, i32
  }
  func.func @transform_1(%arg0: i32, %arg1: i32) -> (i32, i32) {
    %c0_i32 = arith.constant 0 : i32
    %c0_i32_0 = arith.constant 0 : i32
    return %arg1, %c0_i32 : i32, i32
  }
  func.func @transform_2(%arg0: i32, %arg1: i32) -> (i32, i32) {
    %c0_i32 = arith.constant 0 : i32
    %c0_i32_0 = arith.constant 0 : i32
    %c0_i32_1 = arith.constant 0 : i32
    return %c0_i32, %c0_i32_0 : i32, i32
  }
  func.func @transform_3(%arg0: i32, %arg1: i32) -> (i32, i32) {
    %c0_i32 = arith.constant 0 : i32
    %c0_i32_0 = arith.constant 0 : i32
    %c0_i32_1 = arith.constant 0 : i32
    return %c0_i32, %c0_i32_0 : i32, i32
  }
  func.func @transform_4(%arg0: i32, %arg1: i32) -> (i32, i32) {
    %c0_i32 = arith.constant 0 : i32
    %c0_i32_0 = arith.constant 0 : i32
    %c0_i32_1 = arith.constant 0 : i32
    return %c0_i32, %c0_i32_0 : i32, i32
  }
  func.func @transform_5(%arg0: i32, %arg1: i32) -> (i32, i32, i32) {
    %c0_i32 = arith.constant 0 : i32
    %c0_i32_0 = arith.constant 0 : i32
    %c0_i32_1 = arith.constant 0 : i32
    return %arg0, %c0_i32, %c0_i32_0 : i32, i32, i32
  }
  func.func @transform_6(%arg0: i32, %arg1: i32) -> (i32, i32, i32) {
    %c0_i32 = arith.constant 0 : i32
    %c0_i32_0 = arith.constant 0 : i32
    %c0_i32_1 = arith.constant 0 : i32
    return %arg0, %c0_i32, %c0_i32_0 : i32, i32, i32
  }
  func.func @transform_7(%arg0: i32, %arg1: i32) -> (i32, i32) {
    %c0_i32 = arith.constant 0 : i32
    %c0_i32_0 = arith.constant 0 : i32
    %c0_i32_1 = arith.constant 0 : i32
    return %c0_i32, %c0_i32_0 : i32, i32
  }
  func.func @transform_8(%arg0: i32, %arg1: i32) -> (i32, i32) {
    %c0_i32 = arith.constant 0 : i32
    %c0_i32_0 = arith.constant 0 : i32
    %c0_i32_1 = arith.constant 0 : i32
    return %c0_i32, %c0_i32_0 : i32, i32
  }
  func.func @transform_9(%arg0: i32, %arg1: i32) -> (i32, i32) {
    %c0_i32 = arith.constant 0 : i32
    %c0_i32_0 = arith.constant 0 : i32
    %c0_i32_1 = arith.constant 0 : i32
    return %c0_i32, %c0_i32_0 : i32, i32
  }
  func.func @transform_10(%arg0: i32, %arg1: i32) -> (i32, i32) {
    %c0_i32 = arith.constant 0 : i32
    %c0_i32_0 = arith.constant 0 : i32
    %c0_i32_1 = arith.constant 0 : i32
    return %c0_i32, %c0_i32_0 : i32, i32
  }
  func.func @transform_11(%arg0: i32, %arg1: i32) -> (i32, i32) {
    %c0_i32 = arith.constant 0 : i32
    %c0_i32_0 = arith.constant 0 : i32
    %c0_i32_1 = arith.constant 0 : i32
    return %c0_i32, %c0_i32_0 : i32, i32
  }
}

</mosaic_0001>

<bundles_post_ra>
// kernel: molecular_gnn_forward.1
= control target key start
LH: loop header
LB: loop body
LE: loop exit
PB: predicated region body
PF: predicated region fallthrough
CT: control target
= control target key end

     0   :  { %s2761_s17 = smov 0   ;;  %s2763_s18 = smov 0   ;;  %s3099_s0 = inlined_call_operand.vmem [shape: bf16[256,16], index: 0, kind: input, shape index: {}]   ;;  %s3100_s1 = inlined_call_operand.vmem [shape: bf16[256,256], index: 1, kind: input, shape index: {}]   ;;  %s3101_s2 = inlined_call_operand.vmem [shape: bf16[16,256], index: 2, kind: input, shape index: {}]   ;;  %s3102_s3 = inlined_call_operand.vmem [shape: bf16[16,128], index: 3, kind: input, shape index: {}]   ;;  %s3103_s4 = inlined_call_operand.vmem [shape: f32[1,128], index: 4, kind: input, shape index: {}]   ;;  %s3104_s5 = inlined_call_operand.vmem [shape: bf16[3,128,128], index: 5, kind: input, shape index: {}]   ;;  %s3105_s6 = inlined_call_operand.vmem [shape: f32[3,1,128], index: 6, kind: input, shape index: {}]   ;;  %s3106_s7 = inlined_call_operand.vmem [shape: f32[128,16], index: 7, kind: input, shape index: {}]   ;;  %s3107_s8 = inlined_call_operand.vmem [shape: f32[1,16], index: 8, kind: input, shape index: {}]   ;;  %s3108_s9 = inlined_call_operand.vmem [shape: f32[16,128], index: 9, kind: input, shape index: {}]   ;;  %s3109_s10 = inlined_call_operand.vmem [shape: f32[1,128], index: 10, kind: input, shape index: {}]   ;;  %s3110_s11 = inlined_call_operand.vmem [shape: f32[16,128], index: 11, kind: output, shape index: {}]  }
   0x1   :  { %s2765_s19 = smov 0   ;;  %s2767_s20 = smov 0  }
   0x2   :  { %s2769_s21 = smov 0  }
   0x3 LB: > { %3112 = sst [smem:[#allocation4_spill]] %s2695_s20  ;;  %s30_s22 = sadd.s32 1, %s2691_s19  ;;  %s2699_s21 = sphi %s2769_s21, %s21_s21   ;;  %s2695_s20 = sphi %s2767_s20, %s3118_s20   ;;  %s2691_s19 = sphi %s2765_s19, %s3120_s19   ;;  %s2687_s18 = sphi %s2763_s18, %s3116_s18   ;;  %s2683_s17 = sphi %s2761_s17, %s3119_s17  }
   0x4   : > { %s33_s23 = sadd.s32 1, %s2695_s20  ;;  %p31_p0 = scmp.ge.s32.totalorder %s30_s22, 2 }
   0x5   : > { %p1994_p1 = scmp.ge.s32.totalorder %s2699_s21, 1  ;;  %p364_p2 = scmp.lt.s32.totalorder %s2699_s21, 7 }
   0x6   : > { %s3122_s22 = smov (%p31_p0, %s30_s22), 0  ;;  %s3124_s23 = smov (!%p31_p0, %s33_s23), %s2695_s20 }
   0x7   : > { %3113 = sst [smem:[#allocation5_spill]] %s3122_s22  ;;  %p365_p3 = pnand %p1994_p1, %p364_p2 }
   0x8   : > { %p35_p4 = scmp.ge.s32.totalorder %s3124_s23, 3  ;;  %s1995_s24 = sshll.u32 (!%p365_p3), %s2683_s17, 4 }
   0x9   : > { %368 = sbr.rel (%p365_p3) target bundleno = 1429 (0x595), region = 64  ;;  %p415_p5 = scmp.lt.s32.totalorder (!%p365_p3), %s2687_s18, 2 }
   0xa   : > { %s3126_s23 = smov (%p35_p4, %s3124_s23), 0  ;;  %p409_p6 = scmp.lt.s32.totalorder (!%p365_p3), %s1995_s24, 31 }
   0xb   : > { %3114 = sst [smem:[#allocation6_spill]] %s3126_s23  ;;  %p424_p7 = scmp.eq.s32.totalorder (!%p365_p3), %s2687_s18, 0 }
   0xc   : > { %p425_p8 = scmp.eq.s32.totalorder (!%p365_p3), %s2683_s17, 0 }
   0xe   : > { %s2799_s25 = scalar_select %p415_p5, %s2687_s18, 2 }
   0xf   : > { %s3128_s24 = smov (!%p409_p6, %s1995_s24), 31  ;;  %p426_p9 = pnand %p425_p8, %p424_p7 }
  0x10   : > { %s2118_s26 = sshll.u32 %s2799_s25, 6  ;;  %s422_s29 = scalar_lea.vmem %s3105_s6, %s2799_s25 }
  0x11   : > { %s2117_s30 = sshll.u32 %s3128_s24, 3  ;;  %s2809_s14 = scalar_lea.vmem %s3104_s5, %s2118_s26 }
  0x12   : > { %s2814_s23 = scalar_lea.vmem %s3100_s1, %s2117_s30  ;;  %429 = sbr.rel (%p426_p9) target bundleno = 254 (0xfe), region = 68 }
  0x17   : > { %v2593_v0 = vld [vmem:[%s3102_s3] sm:$0xff]   ;;  %vm557_vm0 = vcmask 130048   ;;  %v2596_v3 = vld [vmem:[%s3099_s0 + $0x8] sm:$0xff]   ;;  %v2598_v5 = vld [vmem:[%s3099_s0 + $0x10] sm:$0xff]  }
  0x18   : > { %v2594_v1 = vld [vmem:[%s3099_s0] sm:$0xff]   ;;  %2395 = vmatprep.subr.bf16.mxu0 %v2593_v0  ;;  %2519 = vmatprep.subr.bf16.mxu1 %v2593_v0  ;;  %v2597_v4 = vld [vmem:[%s3099_s0 + $0x48] sm:$0xff]   ;;  %v2599_v6 = vld [vmem:[%s3099_s0 + $0x50] sm:$0xff]  }
  0x19   : > { %v2595_v2 = vld [vmem:[%s3099_s0 + $0x40] sm:$0xff]   ;;  %2396 = vmatpush3.bf16.msra.mxu0 %v2593_v0  ;;  %2520 = vmatpush3.bf16.msra.mxu1 %v2593_v0  ;;  %v2600_v7 = vld [vmem:[%s3099_s0 + $0x18] sm:$0xff]   ;;  %v2604_v11 = vld [vmem:[%s3099_s0 + $0x28] sm:$0xff]  }
  0x1a   : > { %2397 = vmatprep.mubr.msk.bf16.mxu0 %vm557_vm0, %v2594_v1  ;;  %2413 = vmatprep.mubr.msk.bf16.mxu1 %vm557_vm0, %v2595_v2  ;;  %v2601_v8 = vld [vmem:[%s3099_s0 + $0x58] sm:$0xff]   ;;  %v2602_v9 = vld [vmem:[%s3099_s0 + $0x20] sm:$0xff]   ;;  %v2605_v12 = vld [vmem:[%s3099_s0 + $0x68] sm:$0xff]  }
  0x1b   : > { %v2603_v10 = vld [vmem:[%s3099_s0 + $0x60] sm:$0xff]   ;;  %v2606_v13 = vld [vmem:[%s3099_s0 + $0x30] sm:$0xff]   ;;  %v2608_v15 = vld [vmem:[%s3099_s0 + $0x38] sm:$0xff]  }
  0x1c   : > { %2398 = vmatmul.mubr.msk.bf16.vlgmr.msra.gmra.mxu0 %vm557_vm0, %v2596_v3  ;;  %2414 = vmatmul.mubr.msk.bf16.vlgmr.msra.gmra.mxu1 %vm557_vm0, %v2597_v4  ;;  %v2607_v14 = vld [vmem:[%s3099_s0 + $0x70] sm:$0xff]   ;;  %v2609_v16 = vld [vmem:[%s3099_s0 + $0x78] sm:$0xff]   ;;  %v2887_v17 = vld [vmem:[%s3103_s4] ss:$0 sm:$0xff] }
  0x1d   : > { %2401 = vmatprep.mubr.msk.bf16.mxu0 %vm557_vm0, %v2598_v5  ;;  %2417 = vmatprep.mubr.msk.bf16.mxu1 %vm557_vm0, %v2599_v6 }
  0x24   : > { %2402 = vmatmul.mubr.msk.bf16.gmra.mxu0 %vm557_vm0, %v2600_v7  ;;  %2418 = vmatmul.mubr.msk.bf16.gmra.mxu1 %vm557_vm0, %v2601_v8 }
  0x25   : > { %2405 = vmatprep.mubr.msk.bf16.mxu0 %vm557_vm0, %v2602_v9  ;;  %2421 = vmatprep.mubr.msk.bf16.mxu1 %vm557_vm0, %v2603_v10 }
  0x2c   : > { %2406 = vmatmul.mubr.msk.bf16.gmra.mxu0 %vm557_vm0, %v2604_v11  ;;  %2422 = vmatmul.mubr.msk.bf16.gmra.mxu1 %vm557_vm0, %v2605_v12 }
  0x2d   : > { %2409 = vmatprep.mubr.msk.bf16.mxu0 %vm557_vm0, %v2606_v13  ;;  %2425 = vmatprep.mubr.msk.bf16.mxu1 %vm557_vm0, %v2607_v14 }
  0x34   : > { %2410 = vmatmul.mubr.msk.bf16.gmra.mxu0 %vm557_vm0, %v2608_v15  ;;  %2426 = vmatmul.mubr.msk.bf16.gmra.mxu1 %vm557_vm0, %v2609_v16 }
  0xdc   : > { %v2399_v18 = vpop.f32.mrf.mxu0  ;;  %v2415_v19 = vpop.f32.mrf.mxu1 }
  0xdd   : > { %v649_v20 = vadd.f32 %v2399_v18, %v2887_v17  ;;  %v713_v21 = vadd.f32 %v2415_v19, %v2887_v17 }
  0xde   : > { %v640_v22 = vpop.f32.mrf.mxu0  ;;  %v704_v23 = vpop.f32.mrf.mxu1 }
  0xdf   : > { %769 = vst [vmem:[#allocation2 + $0x10] sm:$0xff] %v649_v20  ;;  %785 = vst [vmem:[#allocation2 + $0x90] sm:$0xff] %v713_v21  ;;  %v641_v24 = vadd.f32 %v2887_v17, %v640_v22  ;;  %v705_v25 = vadd.f32 %v2887_v17, %v704_v23 }
  0xe0   : > { %v2400_v26 = vpop.f32.mrf.mxu0  ;;  %v2416_v27 = vpop.f32.mrf.mxu1 }
  0xe1   : > { %767 = vst [vmem:[#allocation2] sm:$0xff] %v641_v24  ;;  %783 = vst [vmem:[#allocation2 + $0x80] sm:$0xff] %v705_v25  ;;  %v652_v28 = vadd.f32 %v2400_v26, %v2887_v17  ;;  %v716_v29 = vadd.f32 %v2416_v27, %v2887_v17 }
  0xe2   : > { %v643_v30 = vpop.f32.mrf.mxu0  ;;  %v707_v31 = vpop.f32.mrf.mxu1 }
  0xe3   : > { %770 = vst [vmem:[#allocation2 + $0x18] sm:$0xff] %v652_v28  ;;  %786 = vst [vmem:[#allocation2 + $0x98] sm:$0xff] %v716_v29  ;;  %v644_v32 = vadd.f32 %v2887_v17, %v643_v30  ;;  %v708_v33 = vadd.f32 %v2887_v17, %v707_v31 }
  0xe4   : > { %v2403_v34 = vpop.f32.mrf.mxu0  ;;  %v2419_v35 = vpop.f32.mrf.mxu1 }
  0xe5   : > { %768 = vst [vmem:[#allocation2 + $0x8] sm:$0xff] %v644_v32  ;;  %784 = vst [vmem:[#allocation2 + $0x88] sm:$0xff] %v708_v33  ;;  %v665_v36 = vadd.f32 %v2403_v34, %v2887_v17  ;;  %v729_v37 = vadd.f32 %v2419_v35, %v2887_v17 }
  0xe6   : > { %v656_v38 = vpop.f32.mrf.mxu0  ;;  %v720_v39 = vpop.f32.mrf.mxu1 }
  0xe7   : > { %773 = vst [vmem:[#allocation2 + $0x30] sm:$0xff] %v665_v36  ;;  %789 = vst [vmem:[#allocation2 + $0xb0] sm:$0xff] %v729_v37  ;;  %v657_v40 = vadd.f32 %v2887_v17, %v656_v38  ;;  %v721_v41 = vadd.f32 %v2887_v17, %v720_v39 }
  0xe8   : > { %v2404_v42 = vpop.f32.mrf.mxu0  ;;  %v2420_v43 = vpop.f32.mrf.mxu1 }
  0xe9   : > { %771 = vst [vmem:[#allocation2 + $0x20] sm:$0xff] %v657_v40  ;;  %787 = vst [vmem:[#allocation2 + $0xa0] sm:$0xff] %v721_v41  ;;  %v668_v44 = vadd.f32 %v2404_v42, %v2887_v17  ;;  %v732_v45 = vadd.f32 %v2420_v43, %v2887_v17 }
  0xea   : > { %v659_v46 = vpop.f32.mrf.mxu0  ;;  %v723_v47 = vpop.f32.mrf.mxu1 }
  0xeb   : > { %774 = vst [vmem:[#allocation2 + $0x38] sm:$0xff] %v668_v44  ;;  %790 = vst [vmem:[#allocation2 + $0xb8] sm:$0xff] %v732_v45  ;;  %v660_v48 = vadd.f32 %v2887_v17, %v659_v46  ;;  %v724_v49 = vadd.f32 %v2887_v17, %v723_v47 }
  0xec   : > { %v2407_v50 = vpop.f32.mrf.mxu0  ;;  %v2423_v51 = vpop.f32.mrf.mxu1 }
  0xed   : > { %772 = vst [vmem:[#allocation2 + $0x28] sm:$0xff] %v660_v48  ;;  %788 = vst [vmem:[#allocation2 + $0xa8] sm:$0xff] %v724_v49  ;;  %v681_v52 = vadd.f32 %v2407_v50, %v2887_v17  ;;  %v745_v53 = vadd.f32 %v2423_v51, %v2887_v17 }
  0xee   : > { %v672_v54 = vpop.f32.mrf.mxu0  ;;  %v736_v55 = vpop.f32.mrf.mxu1 }
  0xef   : > { %777 = vst [vmem:[#allocation2 + $0x50] sm:$0xff] %v681_v52  ;;  %793 = vst [vmem:[#allocation2 + $0xd0] sm:$0xff] %v745_v53  ;;  %v673_v56 = vadd.f32 %v2887_v17, %v672_v54  ;;  %v737_v57 = vadd.f32 %v2887_v17, %v736_v55 }
  0xf0   : > { %v2408_v58 = vpop.f32.mrf.mxu0  ;;  %v2424_v59 = vpop.f32.mrf.mxu1 }
  0xf1   : > { %775 = vst [vmem:[#allocation2 + $0x40] sm:$0xff] %v673_v56  ;;  %791 = vst [vmem:[#allocation2 + $0xc0] sm:$0xff] %v737_v57  ;;  %v684_v60 = vadd.f32 %v2408_v58, %v2887_v17  ;;  %v748_v61 = vadd.f32 %v2424_v59, %v2887_v17 }
  0xf2   : > { %v675_v62 = vpop.f32.mrf.mxu0  ;;  %v739_v63 = vpop.f32.mrf.mxu1 }
  0xf3   : > { %778 = vst [vmem:[#allocation2 + $0x58] sm:$0xff] %v684_v60  ;;  %794 = vst [vmem:[#allocation2 + $0xd8] sm:$0xff] %v748_v61  ;;  %v676_v0 = vadd.f32 %v2887_v17, %v675_v62  ;;  %v740_v1 = vadd.f32 %v2887_v17, %v739_v63 }
  0xf4   : > { %v2411_v2 = vpop.f32.mrf.mxu0  ;;  %v2427_v3 = vpop.f32.mrf.mxu1 }
  0xf5   : > { %776 = vst [vmem:[#allocation2 + $0x48] sm:$0xff] %v676_v0  ;;  %792 = vst [vmem:[#allocation2 + $0xc8] sm:$0xff] %v740_v1  ;;  %v697_v4 = vadd.f32 %v2411_v2, %v2887_v17  ;;  %v761_v5 = vadd.f32 %v2427_v3, %v2887_v17 }
  0xf6   : > { %v688_v6 = vpop.f32.mrf.mxu0  ;;  %v752_v7 = vpop.f32.mrf.mxu1 }
  0xf7   : > { %781 = vst [vmem:[#allocation2 + $0x70] sm:$0xff] %v697_v4  ;;  %797 = vst [vmem:[#allocation2 + $0xf0] sm:$0xff] %v761_v5  ;;  %v689_v8 = vadd.f32 %v2887_v17, %v688_v6  ;;  %v753_v9 = vadd.f32 %v2887_v17, %v752_v7 }
  0xf8   : > { %v2412_v10 = vpop.f32.mrf.mxu0  ;;  %v2428_v11 = vpop.f32.mrf.mxu1 }
  0xf9   : > { %779 = vst [vmem:[#allocation2 + $0x60] sm:$0xff] %v689_v8  ;;  %795 = vst [vmem:[#allocation2 + $0xe0] sm:$0xff] %v753_v9  ;;  %v700_v12 = vadd.f32 %v2412_v10, %v2887_v17  ;;  %v764_v13 = vadd.f32 %v2428_v11, %v2887_v17 }
  0xfa   : > { %v691_v14 = vpop.f32.mrf.mxu0  ;;  %v755_v15 = vpop.f32.mrf.mxu1 }
  0xfb   : > { %782 = vst [vmem:[#allocation2 + $0x78] sm:$0xff] %v700_v12  ;;  %798 = vst [vmem:[#allocation2 + $0xf8] sm:$0xff] %v764_v13  ;;  %v692_v16 = vadd.f32 %v2887_v17, %v691_v14  ;;  %v756_v18 = vadd.f32 %v2887_v17, %v755_v15 }
  0xfd   : > { %780 = vst [vmem:[#allocation2 + $0x68] sm:$0xff] %v692_v16  ;;  %796 = vst [vmem:[#allocation2 + $0xe8] sm:$0xff] %v756_v18 }
  0xfe PF: > { %p2034_p10 = scmp.ne.s32.totalorder %s2683_s17, 0 }
 0x100   : > { %801 = sbr.rel (%p2034_p10) target bundleno = 520 (0x208), region = 72 }
 0x105   : > { %v2610_v19 = vld [vmem:[%s2809_s14 + $0x38] sm:$0xff]   ;;  %v2611_v20 = vld [vmem:[%s2809_s14 + $0x30] sm:$0xff]   ;;  %v2612_v21 = vld [vmem:[%s2809_s14 + $0x28] sm:$0xff]  }
 0x106   : > { %2429 = vmatprep.subr.bf16.mxu0 %v2610_v19  ;;  %2521 = vmatprep.subr.bf16.mxu1 %v2610_v19  ;;  %v2613_v17 = vld [vmem:[%s2809_s14 + $0x20] sm:$0xff]   ;;  %v803_v23 = vld [vmem:[#allocation2 + $0x8] sm:$0xff]  ;;  %v2614_v28 = vld [vmem:[%s2809_s14 + $0x18] sm:$0xff]  }
 0x107   : > { %2430 = vmatpush3.bf16.msra.mxu0 %v2610_v19  ;;  %2529 = vmatpush3.bf16.msra.mxu1 %v2610_v19  ;;  %v802_v22 = vld [vmem:[#allocation2] sm:$0xff]  ;;  %v819_v26 = vld [vmem:[#allocation2 + $0x88] sm:$0xff]  ;;  %v2615_v29 = vld [vmem:[%s2809_s14 + $0x10] sm:$0xff]  }
 0x108   : > { %2431 = vmatprep.subr.bf16.mxu0 %v2611_v20  ;;  %2522 = vmatprep.subr.bf16.mxu1 %v2611_v20  ;;  %v818_v24 = vld [vmem:[#allocation2 + $0x80] sm:$0xff]  ;;  %v834_v25 = vpack.c.bf16 %v803_v23, %v802_v22  ;;  %v2616_v30 = vld [vmem:[%s2809_s14 + $0x8] sm:$0xff]   ;;  %v804_v32 = vld [vmem:[#allocation2 + $0x10] sm:$0xff] }
 0x109   : > { %v842_v27 = vpack.c.bf16 %v819_v26, %v818_v24  ;;  %v2617_v31 = vld [vmem:[%s2809_s14] sm:$0xff]   ;;  %v805_v33 = vld [vmem:[#allocation2 + $0x18] sm:$0xff]  ;;  %v820_v34 = vld [vmem:[#allocation2 + $0x90] sm:$0xff] }
 0x10a   : > { %2445 = vmatprep.mubr.bf16.mxu0 %v834_v25  ;;  %v821_v35 = vld [vmem:[#allocation2 + $0x98] sm:$0xff]  ;;  %v806_v36 = vld [vmem:[#allocation2 + $0x20] sm:$0xff]  ;;  %v807_v37 = vld [vmem:[#allocation2 + $0x28] sm:$0xff]  ;;  %v835_v40 = vpack.c.bf16 %v805_v33, %v804_v32 }
 0x10b   : > { %2432 = vmatpush3.bf16.msra.mxu0 %v2611_v20  ;;  %2530 = vmatpush3.bf16.msra.mxu1 %v2611_v20  ;;  %v822_v38 = vld [vmem:[#allocation2 + $0xa0] sm:$0xff]  ;;  %v823_v39 = vld [vmem:[#allocation2 + $0xa8] sm:$0xff]  ;;  %v843_v41 = vpack.c.bf16 %v821_v35, %v820_v34  ;;  %v836_v42 = vpack.c.bf16 %v807_v37, %v806_v36  ;;  %v808_v44 = vld [vmem:[#allocation2 + $0x30] sm:$0xff] }
 0x10c   : > { %2433 = vmatprep.subr.bf16.mxu0 %v2612_v21  ;;  %2523 = vmatprep.subr.bf16.mxu1 %v2612_v21  ;;  %v844_v43 = vpack.c.bf16 %v823_v39, %v822_v38  ;;  %v809_v45 = vld [vmem:[#allocation2 + $0x38] sm:$0xff]  ;;  %v824_v46 = vld [vmem:[#allocation2 + $0xb0] sm:$0xff]  ;;  %v810_v48 = vld [vmem:[#allocation2 + $0x40] sm:$0xff] }
 0x10d   : > { %2461 = vmatprep.mubr.bf16.mxu1 %v842_v27  ;;  %v825_v47 = vld [vmem:[#allocation2 + $0xb8] sm:$0xff]  ;;  %v811_v49 = vld [vmem:[#allocation2 + $0x48] sm:$0xff]  ;;  %v826_v50 = vld [vmem:[#allocation2 + $0xc0] sm:$0xff]  ;;  %v837_v52 = vpack.c.bf16 %v809_v45, %v808_v44 }
 0x10e   : > { %v827_v51 = vld [vmem:[#allocation2 + $0xc8] sm:$0xff]  ;;  %v845_v53 = vpack.c.bf16 %v825_v47, %v824_v46  ;;  %v838_v54 = vpack.c.bf16 %v811_v49, %v810_v48  ;;  %v812_v56 = vld [vmem:[#allocation2 + $0x50] sm:$0xff]  ;;  %v813_v57 = vld [vmem:[#allocation2 + $0x58] sm:$0xff] }
 0x10f   : > { %2434 = vmatpush3.bf16.msra.mxu0 %v2612_v21  ;;  %2531 = vmatpush3.bf16.msra.mxu1 %v2612_v21  ;;  %v846_v55 = vpack.c.bf16 %v827_v51, %v826_v50  ;;  %v828_v58 = vld [vmem:[#allocation2 + $0xd0] sm:$0xff]  ;;  %v829_v59 = vld [vmem:[#allocation2 + $0xd8] sm:$0xff]  ;;  %v814_v60 = vld [vmem:[#allocation2 + $0x60] sm:$0xff]  ;;  %v839_v0 = vpack.c.bf16 %v813_v57, %v812_v56 }
 0x110   : > { %2435 = vmatprep.subr.bf16.mxu0 %v2613_v17  ;;  %2524 = vmatprep.subr.bf16.mxu1 %v2613_v17  ;;  %v815_v61 = vld [vmem:[#allocation2 + $0x68] sm:$0xff]  ;;  %v830_v62 = vld [vmem:[#allocation2 + $0xe0] sm:$0xff]  ;;  %v847_v1 = vpack.c.bf16 %v829_v59, %v828_v58  ;;  %v816_v4 = vld [vmem:[#allocation2 + $0x70] sm:$0xff] }
 0x111   : > { %v831_v63 = vld [vmem:[#allocation2 + $0xe8] sm:$0xff]  ;;  %v840_v2 = vpack.c.bf16 %v815_v61, %v814_v60  ;;  %v817_v5 = vld [vmem:[#allocation2 + $0x78] sm:$0xff]  ;;  %v832_v6 = vld [vmem:[#allocation2 + $0xf0] sm:$0xff] }
 0x112   : > { %v848_v3 = vpack.c.bf16 %v831_v63, %v830_v62  ;;  %v833_v7 = vld [vmem:[#allocation2 + $0xf8] sm:$0xff]  ;;  %v841_v8 = vpack.c.bf16 %v817_v5, %v816_v4 }
 0x113   : > { %2436 = vmatpush3.bf16.msra.mxu0 %v2613_v17  ;;  %2532 = vmatpush3.bf16.msra.mxu1 %v2613_v17  ;;  %v849_v9 = vpack.c.bf16 %v833_v7, %v832_v6 }
 0x114   : > { %2437 = vmatprep.subr.bf16.mxu0 %v2614_v28  ;;  %2525 = vmatprep.subr.bf16.mxu1 %v2614_v28 }
 0x117   : > { %2438 = vmatpush3.bf16.msra.mxu0 %v2614_v28  ;;  %2533 = vmatpush3.bf16.msra.mxu1 %v2614_v28 }
 0x118   : > { %2439 = vmatprep.subr.bf16.mxu0 %v2615_v29  ;;  %2526 = vmatprep.subr.bf16.mxu1 %v2615_v29 }
 0x11b   : > { %2440 = vmatpush3.bf16.msra.mxu0 %v2615_v29  ;;  %2534 = vmatpush3.bf16.msra.mxu1 %v2615_v29 }
 0x11c   : > { %2441 = vmatprep.subr.bf16.mxu0 %v2616_v30  ;;  %2527 = vmatprep.subr.bf16.mxu1 %v2616_v30 }
 0x11f   : > { %2442 = vmatpush3.bf16.msra.mxu0 %v2616_v30  ;;  %2535 = vmatpush3.bf16.msra.mxu1 %v2616_v30 }
 0x120   : > { %2443 = vmatprep.subr.bf16.mxu0 %v2617_v31  ;;  %2528 = vmatprep.subr.bf16.mxu1 %v2617_v31 }
 0x123   : > { %2444 = vmatpush3.bf16.msra.mxu0 %v2617_v31  ;;  %2536 = vmatpush3.bf16.msra.mxu1 %v2617_v31 }
 0x126   : > { %2446 = vmatmul.mubr.bf16.vlgmr.msra.gmra.mxu0 %v835_v40  ;;  %2462 = vmatmul.mubr.bf16.vlgmr.msra.gmra.mxu1 %v843_v41 }
 0x127   : > { %2449 = vmatprep.mubr.bf16.mxu0 %v836_v42  ;;  %2465 = vmatprep.mubr.bf16.mxu1 %v844_v43 }
 0x12e   : > { %2450 = vmatmul.mubr.bf16.gmra.mxu0 %v837_v52  ;;  %2466 = vmatmul.mubr.bf16.gmra.mxu1 %v845_v53 }
 0x12f   : > { %2453 = vmatprep.mubr.bf16.mxu0 %v838_v54  ;;  %2469 = vmatprep.mubr.bf16.mxu1 %v846_v55 }
 0x136   : > { %2454 = vmatmul.mubr.bf16.gmra.mxu0 %v839_v0  ;;  %2470 = vmatmul.mubr.bf16.gmra.mxu1 %v847_v1 }
 0x137   : > { %2457 = vmatprep.mubr.bf16.mxu0 %v840_v2  ;;  %2473 = vmatprep.mubr.bf16.mxu1 %v848_v3 }
 0x13e   : > { %2458 = vmatmul.mubr.bf16.gmra.mxu0 %v841_v8  ;;  %2474 = vmatmul.mubr.bf16.gmra.mxu1 %v849_v9 }
 0x1e6   : > { %v2447_v10 = vpop.f32.mrf.mxu0  ;;  %v2463_v11 = vpop.f32.mrf.mxu1 }
 0x1e8   : > { %v948_v12 = vpop.f32.mrf.mxu0  ;;  %v1012_v13 = vpop.f32.mrf.mxu1 }
 0x1ea   : > { %v2448_v14 = vpop.f32.mrf.mxu0  ;;  %v2464_v15 = vpop.f32.mrf.mxu1 }
 0x1eb   : > { %v2159_v16 = vpack.c.bf16 %v2448_v14, %v2447_v10  ;;  %v2199_v18 = vpack.c.bf16 %v2464_v15, %v2463_v11 }
 0x1ec   : > { %v951_v19 = vpop.f32.mrf.mxu0  ;;  %v1015_v20 = vpop.f32.mrf.mxu1 }
 0x1ed   : > { %2231 = vst [vmem:[#allocation3 + $0x8] sm:$0xff] %v2159_v16   ;;  %2239 = vst [vmem:[#allocation3 + $0x48] sm:$0xff] %v2199_v18   ;;  %v2154_v21 = vpack.c.bf16 %v951_v19, %v948_v12  ;;  %v2194_v17 = vpack.c.bf16 %v1015_v20, %v1012_v13 }
 0x1ee   : > { %v2451_v22 = vpop.f32.mrf.mxu0  ;;  %v2467_v23 = vpop.f32.mrf.mxu1 }
 0x1ef   : > { %2155 = vst [vmem:[#allocation3] sm:$0xff] %v2154_v21   ;;  %2238 = vst [vmem:[#allocation3 + $0x40] sm:$0xff] %v2194_v17  }
 0x1f0   : > { %v964_v24 = vpop.f32.mrf.mxu0  ;;  %v1028_v25 = vpop.f32.mrf.mxu1 }
 0x1f2   : > { %v2452_v26 = vpop.f32.mrf.mxu0  ;;  %v2468_v27 = vpop.f32.mrf.mxu1 }
 0x1f3   : > { %v2169_v28 = vpack.c.bf16 %v2452_v26, %v2451_v22  ;;  %v2209_v29 = vpack.c.bf16 %v2468_v27, %v2467_v23 }
 0x1f4   : > { %v967_v30 = vpop.f32.mrf.mxu0  ;;  %v1031_v31 = vpop.f32.mrf.mxu1 }
 0x1f5   : > { %2233 = vst [vmem:[#allocation3 + $0x18] sm:$0xff] %v2169_v28   ;;  %2241 = vst [vmem:[#allocation3 + $0x58] sm:$0xff] %v2209_v29   ;;  %v2164_v32 = vpack.c.bf16 %v967_v30, %v964_v24  ;;  %v2204_v33 = vpack.c.bf16 %v1031_v31, %v1028_v25 }
 0x1f6   : > { %v2455_v34 = vpop.f32.mrf.mxu0  ;;  %v2471_v35 = vpop.f32.mrf.mxu1 }
 0x1f7   : > { %2232 = vst [vmem:[#allocation3 + $0x10] sm:$0xff] %v2164_v32   ;;  %2240 = vst [vmem:[#allocation3 + $0x50] sm:$0xff] %v2204_v33  }
 0x1f8   : > { %v980_v36 = vpop.f32.mrf.mxu0  ;;  %v1044_v37 = vpop.f32.mrf.mxu1 }
 0x1fa   : > { %v2456_v38 = vpop.f32.mrf.mxu0  ;;  %v2472_v39 = vpop.f32.mrf.mxu1 }
 0x1fb   : > { %v2179_v40 = vpack.c.bf16 %v2456_v38, %v2455_v34  ;;  %v2219_v41 = vpack.c.bf16 %v2472_v39, %v2471_v35 }
 0x1fc   : > { %v983_v42 = vpop.f32.mrf.mxu0  ;;  %v1047_v43 = vpop.f32.mrf.mxu1 }
 0x1fd   : > { %2235 = vst [vmem:[#allocation3 + $0x28] sm:$0xff] %v2179_v40   ;;  %2243 = vst [vmem:[#allocation3 + $0x68] sm:$0xff] %v2219_v41   ;;  %v2174_v44 = vpack.c.bf16 %v983_v42, %v980_v36  ;;  %v2214_v45 = vpack.c.bf16 %v1047_v43, %v1044_v37 }
 0x1fe   : > { %v2459_v46 = vpop.f32.mrf.mxu0  ;;  %v2475_v47 = vpop.f32.mrf.mxu1 }
 0x1ff   : > { %2234 = vst [vmem:[#allocation3 + $0x20] sm:$0xff] %v2174_v44   ;;  %2242 = vst [vmem:[#allocation3 + $0x60] sm:$0xff] %v2214_v45  }
 0x200   : > { %v996_v48 = vpop.f32.mrf.mxu0  ;;  %v1060_v49 = vpop.f32.mrf.mxu1 }
 0x202   : > { %v2460_v50 = vpop.f32.mrf.mxu0  ;;  %v2476_v51 = vpop.f32.mrf.mxu1 }
 0x203   : > { %v2189_v52 = vpack.c.bf16 %v2460_v50, %v2459_v46  ;;  %v2229_v53 = vpack.c.bf16 %v2476_v51, %v2475_v47 }
 0x204   : > { %v999_v54 = vpop.f32.mrf.mxu0  ;;  %v1063_v55 = vpop.f32.mrf.mxu1 }
 0x205   : > { %2237 = vst [vmem:[#allocation3 + $0x38] sm:$0xff] %v2189_v52   ;;  %2245 = vst [vmem:[#allocation3 + $0x78] sm:$0xff] %v2229_v53   ;;  %v2184_v56 = vpack.c.bf16 %v999_v54, %v996_v48  ;;  %v2224_v57 = vpack.c.bf16 %v1063_v55, %v1060_v49 }
 0x207   : > { %2236 = vst [vmem:[#allocation3 + $0x30] sm:$0xff] %v2184_v56   ;;  %2244 = vst [vmem:[#allocation3 + $0x70] sm:$0xff] %v2224_v57  }
 0x208 PF: > { %v2622_v62 = vld [vmem:[#allocation3 + $0x68] sm:$0xff]   ;;  %v2624_v0 = vld [vmem:[#allocation3 + $0x60] sm:$0xff]   ;;  %v2626_v2 = vld [vmem:[#allocation3 + $0x58] sm:$0xff]   ;;  %p1629_p11 = scmp.eq.s32.totalorder %s2687_s18, 2  ;;  %p1630_p12 = scmp.eq.s32.totalorder %s2683_s17, 1 }
 0x209   : > { %v2623_v63 = vld [vmem:[#allocation3 + $0x28] sm:$0xff]   ;;  %v2625_v1 = vld [vmem:[#allocation3 + $0x20] sm:$0xff]   ;;  %v2627_v3 = vld [vmem:[#allocation3 + $0x18] sm:$0xff]   ;;  %s2075_s28 = sshll.u32 %s2683_s17, 7 }
 0x20a   : > { %v2628_v4 = vld [vmem:[#allocation3 + $0x50] sm:$0xff]   ;;  %v2636_v5 = vld [vmem:[%s2814_s23 + $0x4] ss:$8 sps:$4 sm:$0xff]   ;;  %v2634_v12 = vld [vmem:[%s2814_s23] ss:$8 sps:$4 sm:$0xff]   ;;  %p2948_p13 = pnand %p1630_p12, %p1629_p11  ;;  %s2962_s18 = scalar_lea.vmem [#allocation2], %s2075_s28 }
 0x20b   : > { %v2639_v6 = vld [vmem:[%s2814_s23 + $0x44] ss:$8 sps:$4 sm:$0xff]   ;;  %v2629_v7 = vld [vmem:[#allocation3 + $0x10] sm:$0xff]   ;;  %1499 = vmatprep.mubr.bf16.mxu0 %v2636_v5  ;;  %v2637_v13 = vld [vmem:[%s2814_s23 + $0x40] ss:$8 sps:$4 sm:$0xff]  }
 0x20c   : > { %v2618_v58 = vld [vmem:[#allocation3 + $0x78] sm:$0xff]   ;;  %v2630_v8 = vld [vmem:[#allocation3 + $0x48] sm:$0xff]   ;;  %1531 = vmatprep.mubr.bf16.mxu1 %v2639_v6  ;;  %v2632_v10 = vld [vmem:[#allocation3 + $0x40] sm:$0xff]  }
 0x20d   : > { %v2619_v59 = vld [vmem:[#allocation3 + $0x38] sm:$0xff]   ;;  %2287 = vmatprep.subr.bf16.mxu0 %v2618_v58  ;;  %2537 = vmatprep.subr.bf16.mxu1 %v2618_v58  ;;  %v2631_v9 = vld [vmem:[#allocation3 + $0x8] sm:$0xff]   ;;  %v2633_v11 = vld [vmem:[#allocation3] sm:$0xff]  }
 0x20e   : > { %v2620_v60 = vld [vmem:[#allocation3 + $0x70] sm:$0xff]   ;;  %2288 = vmatpush3.bf16.msra.mxu0 %v2619_v59  ;;  %2545 = vmatpush3.bf16.msra.mxu1 %v2619_v59  ;;  %v2646_v19 = vld [vmem:[%s2814_s23 + $0x24] ss:$8 sps:$4 sm:$0xff]   ;;  %v2650_v21 = vld [vmem:[%s2814_s23 + $0x20] ss:$8 sps:$4 sm:$0xff]  }
 0x20f   : > { %v2621_v61 = vld [vmem:[#allocation3 + $0x30] sm:$0xff]   ;;  %2289 = vmatprep.subr.bf16.mxu0 %v2620_v60  ;;  %2538 = vmatprep.subr.bf16.mxu1 %v2620_v60  ;;  %v2648_v20 = vld [vmem:[%s2814_s23 + $0x64] ss:$8 sps:$4 sm:$0xff]   ;;  %v2651_v17 = vld [vmem:[%s2814_s23 + $0x60] ss:$8 sps:$4 sm:$0xff]  }
 0x210   : > { %v2640_v14 = vld [vmem:[%s2814_s23 + $0x14] ss:$8 sps:$4 sm:$0xff]   ;;  %v2644_v16 = vld [vmem:[%s2814_s23 + $0x10] ss:$8 sps:$4 sm:$0xff]   ;;  %v2958_v28 = vld [vmem:[%s422_s29] ss:$0 sm:$0xff] }
 0x211   : > { %v2642_v15 = vld [vmem:[%s2814_s23 + $0x54] ss:$8 sps:$4 sm:$0xff]   ;;  %v2645_v18 = vld [vmem:[%s2814_s23 + $0x50] ss:$8 sps:$4 sm:$0xff]   ;;  %v1581_v37 = vld [vmem:[%s2962_s18] sm:$0xff] }
 0x212   : > { %2290 = vmatpush3.bf16.msra.mxu0 %v2621_v61  ;;  %2546 = vmatpush3.bf16.msra.mxu1 %v2621_v61  ;;  %v2652_v22 = vld [vmem:[%s2814_s23 + $0x34] ss:$8 sps:$4 sm:$0xff]   ;;  %v2656_v24 = vld [vmem:[%s2814_s23 + $0x30] ss:$8 sps:$4 sm:$0xff]   ;;  %v1589_v38 = vld [vmem:[%s2962_s18 + $0x40] sm:$0xff] }
 0x213   : > { %2291 = vmatprep.subr.bf16.mxu0 %v2622_v62  ;;  %2539 = vmatprep.subr.bf16.mxu1 %v2622_v62  ;;  %v2654_v23 = vld [vmem:[%s2814_s23 + $0x74] ss:$8 sps:$4 sm:$0xff]   ;;  %v2657_v25 = vld [vmem:[%s2814_s23 + $0x70] ss:$8 sps:$4 sm:$0xff]   ;;  %v1582_v51 = vld [vmem:[%s2962_s18 + $0x8] sm:$0xff] }
 0x214   : > { %v1590_v52 = vld [vmem:[%s2962_s18 + $0x48] sm:$0xff] }
 0x216   : > { %2292 = vmatpush3.bf16.msra.mxu0 %v2623_v63  ;;  %2547 = vmatpush3.bf16.msra.mxu1 %v2623_v63 }
 0x217   : > { %2293 = vmatprep.subr.bf16.mxu0 %v2624_v0  ;;  %2540 = vmatprep.subr.bf16.mxu1 %v2624_v0 }
 0x21a   : > { %2294 = vmatpush3.bf16.msra.mxu0 %v2625_v1  ;;  %2548 = vmatpush3.bf16.msra.mxu1 %v2625_v1  ;;  %v1583_v1 = vld [vmem:[%s2962_s18 + $0x10] sm:$0xff] }
 0x21b   : > { %2295 = vmatprep.subr.bf16.mxu0 %v2626_v2  ;;  %2541 = vmatprep.subr.bf16.mxu1 %v2626_v2  ;;  %v1591_v2 = vld [vmem:[%s2962_s18 + $0x50] sm:$0xff] }
 0x21e   : > { %2296 = vmatpush3.bf16.msra.mxu0 %v2627_v3  ;;  %2549 = vmatpush3.bf16.msra.mxu1 %v2627_v3 }
 0x21f   : > { %2297 = vmatprep.subr.bf16.mxu0 %v2628_v4  ;;  %2542 = vmatprep.subr.bf16.mxu1 %v2628_v4 }
 0x222   : > { %2298 = vmatpush3.bf16.msra.mxu0 %v2629_v7  ;;  %2550 = vmatpush3.bf16.msra.mxu1 %v2629_v7 }
 0x223   : > { %2299 = vmatprep.subr.bf16.mxu0 %v2630_v8  ;;  %2543 = vmatprep.subr.bf16.mxu1 %v2630_v8 }
 0x226   : > { %2300 = vmatpush3.bf16.msra.mxu0 %v2631_v9  ;;  %2551 = vmatpush3.bf16.msra.mxu1 %v2631_v9 }
 0x227   : > { %2301 = vmatprep.subr.bf16.mxu0 %v2632_v10  ;;  %2544 = vmatprep.subr.bf16.mxu1 %v2632_v10 }
 0x22a   : > { %2302 = vmatpush3.bf16.msra.mxu0 %v2633_v11  ;;  %2552 = vmatpush3.bf16.msra.mxu1 %v2633_v11 }
 0x22d   : > { %1500 = vmatmul.mubr.bf16.vlgmr.msra.gmra.mxu0 %v2634_v12  ;;  %1532 = vmatmul.mubr.bf16.vlgmr.msra.gmra.mxu1 %v2637_v13 }
 0x22e   : > { %1507 = vmatprep.mubr.bf16.mxu0 %v2640_v14  ;;  %1539 = vmatprep.mubr.bf16.mxu1 %v2642_v15  ;;  %v1584_v15 = vld [vmem:[%s2962_s18 + $0x18] sm:$0xff] }
 0x235   : > { %1508 = vmatmul.mubr.bf16.gmra.mxu0 %v2644_v16  ;;  %1540 = vmatmul.mubr.bf16.gmra.mxu1 %v2645_v18  ;;  %v1592_v16 = vld [vmem:[%s2962_s18 + $0x58] sm:$0xff] }
 0x236   : > { %1515 = vmatprep.mubr.bf16.mxu0 %v2646_v19  ;;  %1547 = vmatprep.mubr.bf16.mxu1 %v2648_v20 }
 0x23d   : > { %1516 = vmatmul.mubr.bf16.gmra.mxu0 %v2650_v21  ;;  %1548 = vmatmul.mubr.bf16.gmra.mxu1 %v2651_v17 }
 0x23e   : > { %1523 = vmatprep.mubr.bf16.mxu0 %v2652_v22  ;;  %1555 = vmatprep.mubr.bf16.mxu1 %v2654_v23 }
 0x245   : > { %1524 = vmatmul.mubr.bf16.gmra.mxu0 %v2656_v24  ;;  %1556 = vmatmul.mubr.bf16.gmra.mxu1 %v2657_v25 }
 0x2ed   : > { %v2303_v26 = vpop.f32.mrf.mxu0  ;;  %v2327_v27 = vpop.f32.mrf.mxu1 }
 0x2ef   : > { %v2304_v29 = vpop.f32.mrf.mxu0  ;;  %v2328_v30 = vpop.f32.mrf.mxu1 }
 0x2f0   : > { %v2305_v31 = vadd.f32 %v2304_v29, %v2303_v26  ;;  %v2329_v32 = vadd.f32 %v2328_v30, %v2327_v27  ;;  %v1585_v30 = vld [vmem:[%s2962_s18 + $0x20] sm:$0xff] }
 0x2f1   : > { %v2306_v33 = vpop.f32.mrf.mxu0  ;;  %v2330_v34 = vpop.f32.mrf.mxu1 }
 0x2f2   : > { %v1502_v35 = vadd.f32 %v2305_v31, %v2958_v28  ;;  %v1534_v36 = vadd.f32 %v2329_v32, %v2958_v28  ;;  %v1593_v31 = vld [vmem:[%s2962_s18 + $0x60] sm:$0xff] }
 0x2f3   : > { %v2307_v39 = vpop.f32.mrf.mxu0  ;;  %v2331_v40 = vpop.f32.mrf.mxu1 }
 0x2f4   : > { %v1564_v41 = vmax.f32 %v1502_v35, 0.0  ;;  %v1572_v42 = vmax.f32 %v1534_v36, 0.0  ;;  %v2308_v43 = vadd.f32 %v2307_v39, %v2306_v33  ;;  %v2332_v44 = vadd.f32 %v2331_v40, %v2330_v34 }
 0x2f5   : > { %v2309_v45 = vpop.f32.mrf.mxu0  ;;  %v2333_v46 = vpop.f32.mrf.mxu1 }
 0x2f6   : > { %v1597_v47 = vadd.f32 %v1581_v37, %v1564_v41  ;;  %v1605_v48 = vadd.f32 %v1589_v38, %v1572_v42  ;;  %v1505_v49 = vadd.f32 %v2308_v43, %v2958_v28  ;;  %v1537_v50 = vadd.f32 %v2332_v44, %v2958_v28  ;;  %v1586_v44 = vld [vmem:[%s2962_s18 + $0x28] sm:$0xff] }
 0x2f7   : > { %v2310_v53 = vpop.f32.mrf.mxu0  ;;  %v2334_v54 = vpop.f32.mrf.mxu1 }
 0x2f8   : > { %1613 = vst [vmem:[%s2962_s18] sm:$0xff] %v1597_v47  ;;  %1621 = vst [vmem:[%s2962_s18 + $0x40] sm:$0xff] %v1605_v48  ;;  %v1565_v55 = vmax.f32 %v1505_v49, 0.0  ;;  %v1573_v56 = vmax.f32 %v1537_v50, 0.0  ;;  %v2311_v57 = vadd.f32 %v2310_v53, %v2309_v45  ;;  %v2335_v58 = vadd.f32 %v2334_v54, %v2333_v46  ;;  %v1594_v45 = vld [vmem:[%s2962_s18 + $0x68] sm:$0xff] }
 0x2f9   : > { %v2312_v59 = vpop.f32.mrf.mxu0  ;;  %v2336_v60 = vpop.f32.mrf.mxu1 }
 0x2fa   : > { %v1598_v61 = vadd.f32 %v1582_v51, %v1565_v55  ;;  %v1606_v62 = vadd.f32 %v1590_v52, %v1573_v56  ;;  %v1510_v63 = vadd.f32 %v2311_v57, %v2958_v28  ;;  %v1542_v0 = vadd.f32 %v2335_v58, %v2958_v28  ;;  %v1587_v58 = vld [vmem:[%s2962_s18 + $0x30] sm:$0xff] }
 0x2fb   : > { %v2313_v3 = vpop.f32.mrf.mxu0  ;;  %v2337_v4 = vpop.f32.mrf.mxu1 }
 0x2fc   : > { %1614 = vst [vmem:[%s2962_s18 + $0x8] sm:$0xff] %v1598_v61  ;;  %1622 = vst [vmem:[%s2962_s18 + $0x48] sm:$0xff] %v1606_v62  ;;  %v1566_v5 = vmax.f32 %v1510_v63, 0.0  ;;  %v1574_v6 = vmax.f32 %v1542_v0, 0.0  ;;  %v2314_v7 = vadd.f32 %v2313_v3, %v2312_v59  ;;  %v2338_v8 = vadd.f32 %v2337_v4, %v2336_v60  ;;  %v1595_v59 = vld [vmem:[%s2962_s18 + $0x70] sm:$0xff] }
 0x2fd   : > { %v2315_v9 = vpop.f32.mrf.mxu0  ;;  %v2339_v10 = vpop.f32.mrf.mxu1 }
 0x2fe   : > { %v1599_v11 = vadd.f32 %v1583_v1, %v1566_v5  ;;  %v1607_v12 = vadd.f32 %v1591_v2, %v1574_v6  ;;  %v1513_v13 = vadd.f32 %v2314_v7, %v2958_v28  ;;  %v1545_v14 = vadd.f32 %v2338_v8, %v2958_v28  ;;  %v1588_v6 = vld [vmem:[%s2962_s18 + $0x38] sm:$0xff] }
 0x2ff   : > { %v2316_v18 = vpop.f32.mrf.mxu0  ;;  %v2340_v19 = vpop.f32.mrf.mxu1  ;;  %v1596_v7 = vld [vmem:[%s2962_s18 + $0x78] sm:$0xff] }
 0x300   : > { %1615 = vst [vmem:[%s2962_s18 + $0x10] sm:$0xff] %v1599_v11  ;;  %1623 = vst [vmem:[%s2962_s18 + $0x50] sm:$0xff] %v1607_v12  ;;  %v1567_v20 = vmax.f32 %v1513_v13, 0.0  ;;  %v1575_v21 = vmax.f32 %v1545_v14, 0.0  ;;  %v2317_v17 = vadd.f32 %v2316_v18, %v2315_v9  ;;  %v2341_v22 = vadd.f32 %v2340_v19, %v2339_v10 }
 0x301   : > { %v2318_v23 = vpop.f32.mrf.mxu0  ;;  %v2342_v24 = vpop.f32.mrf.mxu1 }
 0x302   : > { %v1600_v25 = vadd.f32 %v1584_v15, %v1567_v20  ;;  %v1608_v26 = vadd.f32 %v1592_v16, %v1575_v21  ;;  %v1518_v27 = vadd.f32 %v2317_v17, %v2958_v28  ;;  %v1550_v29 = vadd.f32 %v2341_v22, %v2958_v28 }
 0x303   : > { %v2319_v32 = vpop.f32.mrf.mxu0  ;;  %v2343_v33 = vpop.f32.mrf.mxu1 }
 0x304   : > { %1616 = vst [vmem:[%s2962_s18 + $0x18] sm:$0xff] %v1600_v25  ;;  %1624 = vst [vmem:[%s2962_s18 + $0x58] sm:$0xff] %v1608_v26  ;;  %v1568_v34 = vmax.f32 %v1518_v27, 0.0  ;;  %v1576_v35 = vmax.f32 %v1550_v29, 0.0  ;;  %v2320_v36 = vadd.f32 %v2319_v32, %v2318_v23  ;;  %v2344_v37 = vadd.f32 %v2343_v33, %v2342_v24 }
 0x305   : > { %v2321_v38 = vpop.f32.mrf.mxu0  ;;  %v2345_v39 = vpop.f32.mrf.mxu1 }
 0x306   : > { %v1601_v40 = vadd.f32 %v1585_v30, %v1568_v34  ;;  %v1609_v41 = vadd.f32 %v1593_v31, %v1576_v35  ;;  %v1521_v42 = vadd.f32 %v2320_v36, %v2958_v28  ;;  %v1553_v43 = vadd.f32 %v2344_v37, %v2958_v28 }
 0x307   : > { %v2322_v46 = vpop.f32.mrf.mxu0  ;;  %v2346_v47 = vpop.f32.mrf.mxu1 }
 0x308   : > { %1617 = vst [vmem:[%s2962_s18 + $0x20] sm:$0xff] %v1601_v40  ;;  %1625 = vst [vmem:[%s2962_s18 + $0x60] sm:$0xff] %v1609_v41  ;;  %v1569_v48 = vmax.f32 %v1521_v42, 0.0  ;;  %v1577_v49 = vmax.f32 %v1553_v43, 0.0  ;;  %v2323_v50 = vadd.f32 %v2322_v46, %v2321_v38  ;;  %v2347_v51 = vadd.f32 %v2346_v47, %v2345_v39 }
 0x309   : > { %v2324_v52 = vpop.f32.mrf.mxu0  ;;  %v2348_v53 = vpop.f32.mrf.mxu1 }
 0x30a   : > { %v1602_v54 = vadd.f32 %v1586_v44, %v1569_v48  ;;  %v1610_v55 = vadd.f32 %v1594_v45, %v1577_v49  ;;  %v1526_v56 = vadd.f32 %v2323_v50, %v2958_v28  ;;  %v1558_v57 = vadd.f32 %v2347_v51, %v2958_v28 }
 0x30b   : > { %v2325_v60 = vpop.f32.mrf.mxu0  ;;  %v2349_v61 = vpop.f32.mrf.mxu1 }
 0x30c   : > { %1618 = vst [vmem:[%s2962_s18 + $0x28] sm:$0xff] %v1602_v54  ;;  %1626 = vst [vmem:[%s2962_s18 + $0x68] sm:$0xff] %v1610_v55  ;;  %v1570_v62 = vmax.f32 %v1526_v56, 0.0  ;;  %v1578_v63 = vmax.f32 %v1558_v57, 0.0  ;;  %v2326_v0 = vadd.f32 %v2325_v60, %v2324_v52  ;;  %v2350_v1 = vadd.f32 %v2349_v61, %v2348_v53 }
 0x30e   : > { %v1603_v2 = vadd.f32 %v1587_v58, %v1570_v62  ;;  %v1611_v3 = vadd.f32 %v1595_v59, %v1578_v63  ;;  %v1529_v4 = vadd.f32 %v2326_v0, %v2958_v28  ;;  %v1561_v5 = vadd.f32 %v2350_v1, %v2958_v28 }
 0x310   : > { %1619 = vst [vmem:[%s2962_s18 + $0x30] sm:$0xff] %v1603_v2  ;;  %1627 = vst [vmem:[%s2962_s18 + $0x70] sm:$0xff] %v1611_v3  ;;  %v1571_v8 = vmax.f32 %v1529_v4, 0.0  ;;  %v1579_v9 = vmax.f32 %v1561_v5, 0.0  ;;  %1634 = sbr.rel (%p2948_p13) target bundleno = 1429 (0x595), region = 76 }
 0x312   : > { %v1604_v10 = vadd.f32 %v1588_v6, %v1571_v8  ;;  %v1612_v11 = vadd.f32 %v1596_v7, %v1579_v9 }
 0x314   : > { %1620 = vst [vmem:[%s2962_s18 + $0x38] sm:$0xff] %v1604_v10  ;;  %1628 = vst [vmem:[%s2962_s18 + $0x78] sm:$0xff] %v1612_v11 }
 0x315   : > { %v2660_v37 = vld [vmem:[%s3101_s2 + $0x4] ss:$8 sps:$4 sm:$0xff]   ;;  %v1751_v39 = vld [vmem:[%s3106_s7 + $0x78] sm:$0xff]  ;;  %v1750_v43 = vld [vmem:[%s3106_s7 + $0x70] sm:$0xff]  ;;  %vm1845_vm1 = vcmask 130048  }
 0x316   : > { %1727 = vmatprep.mubr.bf16.mxu0 %v2660_v37  ;;  %2477 = vmatprep.subr.mxu1 %v1751_v39  ;;  %v1749_v46 = vld [vmem:[%s3106_s7 + $0x68] sm:$0xff]  ;;  %v1748_v51 = vld [vmem:[%s3106_s7 + $0x60] sm:$0xff]  ;;  %v1747_v54 = vld [vmem:[%s3106_s7 + $0x58] sm:$0xff] }
 0x317   : > { %2478 = vmatpush3.msra.mxu1 %v1751_v39  ;;  %v1746_v59 = vld [vmem:[%s3106_s7 + $0x50] sm:$0xff]  ;;  %v1745_v62 = vld [vmem:[%s3106_s7 + $0x48] sm:$0xff]  ;;  %v1744_v3 = vld [vmem:[%s3106_s7 + $0x40] sm:$0xff] }
 0x318   : > { %2479 = vmatprep.subr.mxu1 %v1750_v43  ;;  %v1743_v4 = vld [vmem:[%s3106_s7 + $0x38] sm:$0xff]  ;;  %v1742_v6 = vld [vmem:[%s3106_s7 + $0x30] sm:$0xff]  ;;  %v2658_v7 = vld [vmem:[%s3101_s2] ss:$8 sps:$4 sm:$0xff]  }
 0x319   : > { %2480 = vmatpush3.msra.mxu1 %v1750_v43  ;;  %v1741_v8 = vld [vmem:[%s3106_s7 + $0x28] sm:$0xff]  ;;  %v1740_v9 = vld [vmem:[%s3106_s7 + $0x20] sm:$0xff]  ;;  %v1739_v10 = vld [vmem:[%s3106_s7 + $0x18] sm:$0xff] }
 0x31a   : > { %2481 = vmatprep.subr.mxu1 %v1749_v46  ;;  %v1738_v11 = vld [vmem:[%s3106_s7 + $0x10] sm:$0xff] }
 0x31b   : > { %v1667_v12 = vld [vmem:[#allocation2 + $0xf0] sm:$0xff]  ;;  %v1668_v13 = vld [vmem:[#allocation2 + $0xf8] sm:$0xff]  ;;  %v1665_v18 = vld [vmem:[#allocation2 + $0xe0] sm:$0xff]  ;;  %2482 = vmatpush3.msra.mxu1 %v1749_v46 }
 0x31c   : > { %v1651_v14 = vld [vmem:[#allocation2 + $0x70] sm:$0xff]  ;;  %v1684_v15 = vpack.c.bf16 %v1668_v13, %v1667_v12  ;;  %v1652_v16 = vld [vmem:[#allocation2 + $0x78] sm:$0xff]  ;;  %v1666_v28 = vld [vmem:[#allocation2 + $0xe8] sm:$0xff]  ;;  %2483 = vmatprep.subr.mxu1 %v1748_v51 }
 0x31d   : > { %v1676_v19 = vpack.c.bf16 %v1652_v16, %v1651_v14  ;;  %v1683_v20 = vpack.c.bf16 %v1666_v28, %v1665_v18  ;;  %v1649_v21 = vld [vmem:[#allocation2 + $0x60] sm:$0xff]  ;;  %v1650_v17 = vld [vmem:[#allocation2 + $0x68] sm:$0xff]  ;;  %v1663_v22 = vld [vmem:[#allocation2 + $0xd0] sm:$0xff]  ;;  %2484 = vmatpush3.msra.mxu1 %v1748_v51 }
 0x31e   : > { %2351 = vmatprep.subr.bf16.mxu0 %v1684_v15  ;;  %v1664_v23 = vld [vmem:[#allocation2 + $0xd8] sm:$0xff]  ;;  %v1675_v24 = vpack.c.bf16 %v1650_v17, %v1649_v21  ;;  %v1647_v26 = vld [vmem:[#allocation2 + $0x50] sm:$0xff]  ;;  %v1661_v29 = vld [vmem:[#allocation2 + $0xc0] sm:$0xff]  ;;  %2485 = vmatprep.subr.mxu1 %v1747_v54 }
 0x31f   : > { %2352 = vmatpush3.bf16.msra.mxu0 %v1676_v19  ;;  %v1682_v25 = vpack.c.bf16 %v1664_v23, %v1663_v22  ;;  %v1648_v27 = vld [vmem:[#allocation2 + $0x58] sm:$0xff]  ;;  %v1662_v30 = vld [vmem:[#allocation2 + $0xc8] sm:$0xff]  ;;  %v1645_v33 = vld [vmem:[#allocation2 + $0x40] sm:$0xff]  ;;  %2486 = vmatpush3.msra.mxu1 %v1747_v54 }
 0x320   : > { %2353 = vmatprep.subr.bf16.mxu0 %v1683_v20  ;;  %v1674_v31 = vpack.c.bf16 %v1648_v27, %v1647_v26  ;;  %v1681_v32 = vpack.c.bf16 %v1662_v30, %v1661_v29  ;;  %v1646_v34 = vld [vmem:[#allocation2 + $0x48] sm:$0xff]  ;;  %v1659_v35 = vld [vmem:[#allocation2 + $0xb0] sm:$0xff]  ;;  %v1660_v36 = vld [vmem:[#allocation2 + $0xb8] sm:$0xff]  ;;  %2487 = vmatprep.subr.mxu1 %v1746_v59 }
 0x321   : > { %v1673_v38 = vpack.c.bf16 %v1646_v34, %v1645_v33  ;;  %v1680_v40 = vpack.c.bf16 %v1660_v36, %v1659_v35  ;;  %v1643_v41 = vld [vmem:[#allocation2 + $0x30] sm:$0xff]  ;;  %v1644_v42 = vld [vmem:[#allocation2 + $0x38] sm:$0xff]  ;;  %v1657_v44 = vld [vmem:[#allocation2 + $0xa0] sm:$0xff]  ;;  %2488 = vmatpush3.msra.mxu1 %v1746_v59 }
 0x322   : > { %v1658_v45 = vld [vmem:[#allocation2 + $0xa8] sm:$0xff]  ;;  %v1672_v47 = vpack.c.bf16 %v1644_v42, %v1643_v41  ;;  %v1641_v49 = vld [vmem:[#allocation2 + $0x20] sm:$0xff]  ;;  %v1655_v52 = vld [vmem:[#allocation2 + $0x90] sm:$0xff]  ;;  %2489 = vmatprep.subr.mxu1 %v1745_v62 }
 0x323   : > { %2354 = vmatpush3.bf16.msra.mxu0 %v1675_v24  ;;  %v1679_v48 = vpack.c.bf16 %v1658_v45, %v1657_v44  ;;  %v1642_v50 = vld [vmem:[#allocation2 + $0x28] sm:$0xff]  ;;  %v1656_v53 = vld [vmem:[#allocation2 + $0x98] sm:$0xff]  ;;  %v1639_v57 = vld [vmem:[#allocation2 + $0x10] sm:$0xff]  ;;  %2490 = vmatpush3.msra.mxu1 %v1745_v62 }
 0x324   : > { %2355 = vmatprep.subr.bf16.mxu0 %v1682_v25  ;;  %v1671_v55 = vpack.c.bf16 %v1642_v50, %v1641_v49  ;;  %v1678_v56 = vpack.c.bf16 %v1656_v53, %v1655_v52  ;;  %v1640_v58 = vld [vmem:[#allocation2 + $0x18] sm:$0xff]  ;;  %v1653_v60 = vld [vmem:[#allocation2 + $0x80] sm:$0xff]  ;;  %v1654_v61 = vld [vmem:[#allocation2 + $0x88] sm:$0xff]  ;;  %2491 = vmatprep.subr.mxu1 %v1744_v3 }
 0x325   : > { %v1670_v63 = vpack.c.bf16 %v1640_v58, %v1639_v57  ;;  %v1677_v0 = vpack.c.bf16 %v1654_v61, %v1653_v60  ;;  %v1637_v1 = vld [vmem:[#allocation2] sm:$0xff]  ;;  %v1638_v2 = vld [vmem:[#allocation2 + $0x8] sm:$0xff]  ;;  %2492 = vmatpush3.msra.mxu1 %v1744_v3 }
 0x326   : > { %v1669_v5 = vpack.c.bf16 %v1638_v2, %v1637_v1  ;;  %2493 = vmatprep.subr.mxu1 %v1743_v4  ;;  %v1737_v12 = vld [vmem:[%s3106_s7 + $0x8] sm:$0xff]  ;;  %v1736_v13 = vld [vmem:[%s3106_s7] sm:$0xff] }
 0x327   : > { %2356 = vmatpush3.bf16.msra.mxu0 %v1674_v31  ;;  %2494 = vmatpush3.msra.mxu1 %v1743_v4  ;;  %v1837_v20 = vld [vmem:[%s3108_s9 + $0x8] sm:$0xff]  ;;  %v1836_v21 = vld [vmem:[%s3108_s9] sm:$0xff] }
 0x328   : > { %2357 = vmatprep.subr.bf16.mxu0 %v1681_v32  ;;  %2495 = vmatprep.subr.mxu1 %v1742_v6  ;;  %v2111_v17 = vld [vmem:[%s3107_s8] ss:$0 sm:$0xff] }
 0x329   : > { %2496 = vmatpush3.msra.mxu1 %v1742_v6  ;;  %v2112_v29 = vld [vmem:[%s3109_s10] ss:$0 sm:$0xff] }
 0x32a   : > { %2497 = vmatprep.subr.mxu1 %v1741_v8 }
 0x32b   : > { %2358 = vmatpush3.bf16.msra.mxu0 %v1673_v38  ;;  %2498 = vmatpush3.msra.mxu1 %v1741_v8 }
 0x32c   : > { %2359 = vmatprep.subr.bf16.mxu0 %v1680_v40  ;;  %2499 = vmatprep.subr.mxu1 %v1740_v9 }
 0x32d   : > { %2500 = vmatpush3.msra.mxu1 %v1740_v9 }
 0x32e   : > { %2501 = vmatprep.subr.mxu1 %v1739_v10 }
 0x32f   : > { %2360 = vmatpush3.bf16.msra.mxu0 %v1672_v47  ;;  %2502 = vmatpush3.msra.mxu1 %v1739_v10 }
 0x330   : > { %2361 = vmatprep.subr.bf16.mxu0 %v1679_v48  ;;  %2503 = vmatprep.subr.mxu1 %v1738_v11 }
 0x331   : > { %2504 = vmatpush3.msra.mxu1 %v1738_v11 }
 0x332   : > { %2505 = vmatprep.subr.mxu1 %v1737_v12 }
 0x333   : > { %2362 = vmatpush3.bf16.msra.mxu0 %v1671_v55  ;;  %2506 = vmatpush3.msra.mxu1 %v1737_v12 }
 0x334   : > { %2363 = vmatprep.subr.bf16.mxu0 %v1678_v56  ;;  %2507 = vmatprep.subr.mxu1 %v1736_v13 }
 0x335   : > { %2508 = vmatpush3.msra.mxu1 %v1736_v13 }
 0x336   : > { %2512 = vmatprep.subr.mxu1 %v1837_v20 }
 0x337   : > { %2364 = vmatpush3.bf16.msra.mxu0 %v1670_v63 }
 0x338   : > { %2365 = vmatprep.subr.bf16.mxu0 %v1677_v0 }
 0x33b   : > { %2366 = vmatpush3.bf16.msra.mxu0 %v1669_v5 }
 0x33e   : > { %1728 = vmatmul.mubr.bf16.vlgmr.msra.gmra.mxu0 %v2658_v7 }
 0x3fe   : > { %v2367_v14 = vpop.f32.mrf.mxu0 }
 0x400   : > { %v2368_v15 = vpop.f32.mrf.mxu0 }
 0x401   : > { %v2369_v16 = vadd.f32 %v2368_v15, %v2367_v14 }
 0x402   : > { %v2370_v18 = vpop.f32.mrf.mxu0 }
 0x403   : > { %2509 = vmatprep.mubr.f32.mxu1 %v2369_v16 }
 0x404   : > { %v2371_v28 = vpop.f32.mrf.mxu0 }
 0x405   : > { %v2372_v19 = vadd.f32 %v2371_v28, %v2370_v18 }
 0x407   : > { %2510 = vmatmul.mubr.f32.vlgmr.msra.gmra.mxu1 %v2372_v19 }
 0x408   : > { %2513 = vmatpush3.msra.mxu1 %v1837_v20 }
 0x409   : > { %2514 = vmatprep.subr.mxu1 %v1836_v21 }
 0x40a   : > { %2515 = vmatpush3.msra.mxu1 %v1836_v21 }
 0x4c7   : > { %v2511_v22 = vpop.f32.mrf.mxu1 }
 0x4c8   : > { %v1831_v23 = vadd.f32 %v2511_v22, %v2111_v17 }
 0x4c9   : > { %v1825_v24 = vpop.f32.mrf.mxu1 }
 0x4ca   : > { %v1826_v25 = vadd.f32 %v2111_v17, %v1825_v24  ;;  %v1835_v27 = vmax.f32 %v1831_v23, 0.0 }
 0x4cc   : > { %v1834_v26 = vmax.f32 %v1826_v25, 0.0 }
 0x4ce   : > { %2516 = vmatprep.mubr.msk.f32.mxu1 %vm1845_vm1, %v1834_v26 }
 0x4cf   : > { %2517 = vmatmul.mubr.msk.f32.vlgmr.msra.gmra.mxu1 %vm1845_vm1, %v1835_v27 }
 0x58f   : > { %v2518_v30 = vpop.f32.mrf.mxu1 }
 0x590   : > { %v1924_v31 = vadd.f32 %v2518_v30, %v2112_v29 }
 0x591   : > { %v1918_v32 = vpop.f32.mrf.mxu1 }
 0x592   : > { %1928 = vst [vmem:[%s3110_s11 + $0x8] sm:$0xff] %v1924_v31  ;;  %v1919_v33 = vadd.f32 %v2112_v29, %v1918_v32 }
 0x594   : > { %1927 = vst [vmem:[%s3110_s11] sm:$0xff] %v1919_v33 }
 0x595 PF: > { %s21_s21 = sadd.s32 1, %s2699_s21   ;;  %s3116_s18 = sld [smem:[#allocation4_spill]] }
 0x596   : > { %p18_p0 = scmp.ge.s32.totalorder %s21_s21, 8   ;;  %s3117_s24 = sld [smem:[#allocation5_spill]] }
 0x597   : > { %s3118_s20 = sld [smem:[#allocation6_spill]]  ;;  %s3119_s17 = smov %s2691_s19 }
 0x598   :  { %20 = sbr.rel (!%p18_p0) target bundleno = 3 (0x3), region = 109 }
 0x59c   : > { %s3120_s19 = smov %s3117_s24 }

</bundles_post_ra>
